<compile_context>
chip_gen: v5e
topology: v5e:2x2
jax: 0.10.0
libtpu: 0.0.40
codegen_flags: <defaults>
</compile_context>

<pallas_src>
import functools

import jax
import jax.numpy as jnp
from jax.experimental import pallas as pl
from jax.experimental.pallas import tpu as pltpu


def _round_up(x, m):
    return ((x + m - 1) // m) * m


def _largest_divisor_leq(n, limit):
    for d in range(min(n, limit), 0, -1):
        if n % d == 0:
            return d
    return 1


# ----------------------------------------------------------------------------
# Fused kernel.  PyTorch GRU gate order (r, z, n):
#   r = sigmoid(x W_ir + b_ir + h W_hr + b_hr)
#   z = sigmoid(x W_iz + b_iz + h W_hz + b_hz)
#   n = tanh  (x W_in + b_in + r * (h W_hn + b_hn))
#   h' = (1 - z) * n + z * h  ==  n + z * (h - n)
# The x-side projection (incl. b_i* and the r/z b_h*) is baked into the ip table.
# ----------------------------------------------------------------------------
def decoder_kernel(ip_ref, h0_ref, wh_ref, bhn_ref, w1_ref, b1_ref,
                   w2_ref, b2_ref,
                   logits_ref, hT_ref,
                   h_scr, o_scr, h1_scr, *, TR, BT, Hp):
    c = pl.program_id(1)               # T-chunk index (serial carry)
    j = pl.program_id(2)               # V-tile index
    last_c = pl.num_programs(1) - 1
    TV = logits_ref.shape[2]

    # (0) load the initial hidden state for this batch tile once.
    @pl.when(jnp.logical_and(c == 0, j == 0))
    def _():
        h_scr[...] = h0_ref[...]

    # (1)+(2) once per (batch tile, T-chunk): serial GRU recurrence + first head
    # matmul; both results are reused by every V-tile of this chunk.
    @pl.when(j == 0)
    def _():
        wh = wh_ref[...]                                   # (Hp, 3Hp) bf16, hoisted
        bhn = jnp.broadcast_to(bhn_ref[...], (BT, Hp))     # hoisted out of the loop

        def step(t, h):
            ip_t = ip_ref[t]                               # (BT, 3Hp) f32, aligned gates
            hp = jnp.dot(h.astype(jnp.bfloat16), wh,
                         preferred_element_type=jnp.float32)
            r = jax.nn.sigmoid(ip_t[:, 0:Hp] + hp[:, 0:Hp])
            z = jax.nn.sigmoid(ip_t[:, Hp:2 * Hp] + hp[:, Hp:2 * Hp])
            n = jnp.tanh(ip_t[:, 2 * Hp:3 * Hp] + r * (hp[:, 2 * Hp:3 * Hp] + bhn))
            h_new = n + z * (h - n)                        # == (1-z)*n + z*h
            o_scr[t] = h_new                               # full (8,128)-tile store
            return h_new

        h_last = jax.lax.fori_loop(0, TR, step, h_scr[...], unroll=True)
        h_scr[...] = h_last

        @pl.when(c == last_c)
        def _():
            hT_ref[...] = h_last

        # first head matmul, cached in VMEM and shared across all V-tiles
        o_flat = o_scr[...].reshape(TR * BT, Hp)
        h1 = jnp.dot(o_flat.astype(jnp.bfloat16), w1_ref[...],
                     preferred_element_type=jnp.float32) + b1_ref[...]
        h1_scr[...] = jnp.maximum(h1, 0.0)

    # (3) lane-dense logits tile for this (chunk, V-tile), streamed to HBM.
    logits = jnp.dot(h1_scr[...].astype(jnp.bfloat16), w2_ref[...],
                     preferred_element_type=jnp.float32) + b2_ref[...]
    logits_ref[...] = logits.reshape(TR, BT, TV)


def decoder_forward_pallas(x_tokens, hidden, prep):
    """x_tokens: (T, B) int32, hidden: (1, B, H). Returns (logits (T,B,V), h (1,B,H))."""
    T, B = x_tokens.shape
    H = hidden.shape[2]
    V = prep["ip_table"].shape[0]
    Hp = prep["w_h"].shape[0]
    Fp = prep["w1"].shape[1]
    Vp = prep["w2"].shape[1]

    BT = 8                                       # batch rows per block (sublane tile)
    B_pad = _round_up(B, BT)
    n_b = B_pad // BT

    TR = _largest_divisor_leq(T, max(1, 256 // BT))   # timesteps per chunk (<=256 rows)
    n_c = T // TR

    TV = min(Vp, 512)                            # lane-dense V tile
    while Vp % TV:
        TV -= 128
    n_v = Vp // TV

    # Embedding gather folded into the precomputed x-side projection table.
    ip = prep["ip_table"][x_tokens]                          # (T, B, 3Hp) f32
    ip = jnp.pad(ip, ((0, 0), (0, B_pad - B), (0, 0)))       # zero-pad batch rows
    h0 = jnp.pad(hidden[0], ((0, B_pad - B), (0, Hp - H)))   # zero-pad rows + lanes

    kernel = functools.partial(decoder_kernel, TR=TR, BT=BT, Hp=Hp)

    logits_p, hT_p = pl.pallas_call(
        kernel,
        out_shape=(jax.ShapeDtypeStruct((T, B_pad, Vp), jnp.float32),
                   jax.ShapeDtypeStruct((B_pad, Hp), jnp.float32)),
        grid_spec=pltpu.PrefetchScalarGridSpec(
            num_scalar_prefetch=0,
            grid=(n_b, n_c, n_v),
            in_specs=[
                pl.BlockSpec((TR, BT, 3 * Hp), lambda b, c, j: (c, b, 0)),   # ip chunk
                pl.BlockSpec((BT, Hp),         lambda b, c, j: (b, 0)),      # h0 tile
                pl.BlockSpec((Hp, 3 * Hp),     lambda b, c, j: (0, 0)),      # w_h
                pl.BlockSpec((1, Hp),          lambda b, c, j: (0, 0)),      # b_hn
                pl.BlockSpec((Hp, Fp),         lambda b, c, j: (0, 0)),      # w1
                pl.BlockSpec((1, Fp),          lambda b, c, j: (0, 0)),      # b1
                pl.BlockSpec((Fp, TV),         lambda b, c, j: (0, j)),      # w2 V-tile
                pl.BlockSpec((1, TV),          lambda b, c, j: (0, j)),      # b2 V-tile
            ],
            out_specs=[
                pl.BlockSpec((TR, BT, TV),     lambda b, c, j: (c, b, j)),   # logits
                pl.BlockSpec((BT, Hp),         lambda b, c, j: (b, 0)),      # h_T
            ],
            scratch_shapes=[
                pltpu.VMEM((BT, Hp), jnp.float32),          # h carry across T-chunks
                pltpu.VMEM((TR, BT, Hp), jnp.float32),      # per-chunk GRU outputs
                pltpu.VMEM((TR * BT, Fp), jnp.float32),     # per-chunk relu(o@W1+b1)
            ]),
        compiler_params=pltpu.CompilerParams(
            dimension_semantics=("parallel", "arbitrary", "arbitrary"),
            vmem_limit_bytes=32 * 1024 * 1024),
    )(ip, h0, prep["w_h"], prep["b_hn"], prep["w1"], prep["b1"],
      prep["w2"], prep["b2"])

    logits = logits_p[:, :B, :V]                 # strip batch / vocab padding
    hT = hT_p[:B, :H][None, :, :]                # strip padding, restore (1,B,H)
    return logits, hT


decoder_gru_forward = jax.jit(decoder_forward_pallas)


# ----------------------------------------------------------------------------
# Parameter construction (PyTorch-shaped) + one-time kernel-friendly re-layout.
# ----------------------------------------------------------------------------
def init_params(key, vocab_size, hidden_size, embedding_size, feature_size):
    ks = jax.random.split(key, 9)
    scale = 0.1
    H, E, F, V = hidden_size, embedding_size, feature_size, vocab_size
    params = {
        "embedding": scale * jax.random.normal(ks[0], (V, E), jnp.float32),
        # PyTorch GRU layouts: (3H, E), (3H, H), (3H,), (3H,)  (gate order r,z,n)
        "w_ih": scale * jax.random.normal(ks[1], (3 * H, E), jnp.float32),
        "w_hh": scale * jax.random.normal(ks[2], (3 * H, H), jnp.float32),
        "b_ih": scale * jax.random.normal(ks[3], (3 * H,), jnp.float32),
        "b_hh": scale * jax.random.normal(ks[4], (3 * H,), jnp.float32),
        # out: Linear(H->F), out2: Linear(F->V); PyTorch weight = (out, in)
        "w_out": scale * jax.random.normal(ks[5], (F, H), jnp.float32),
        "b_out": scale * jax.random.normal(ks[6], (F,), jnp.float32),
        "w_out2": scale * jax.random.normal(ks[7], (V, F), jnp.float32),
        "b_out2": scale * jax.random.normal(ks[8], (V,), jnp.float32),
    }
    total = sum(int(p.size) for p in params.values())
    print("Decoder has a total of {0:d} parameters".format(total))
    return params


def prepare_decoder_params(params, hidden_size):
    """One-time (outside jit): lane-pad H/F/V, fuse gate weights, pre-sum r/z
    biases, bake embedding @ W_ih^T into a gather table, bf16 MXU weights."""
    H = hidden_size
    V = params["embedding"].shape[0]
    F = params["w_out"].shape[0]
    Hp, Fp, Vp = _round_up(H, 128), _round_up(F, 128), _round_up(V, 128)

    b_ih, b_hh = params["b_ih"], params["b_hh"]
    # r/z gates absorb BOTH biases into the x-side table; n keeps b_hn separate
    # (it is multiplied by r inside the recurrence).
    b_i = jnp.concatenate([b_ih[:2 * H] + b_hh[:2 * H], b_ih[2 * H:]])

    # Precomputed x-side table (f32, exact): row v = embedding[v] @ W_ih^T + b_i.
    # TODO(synk): fall back to an in-kernel (T*B,E)@(E,3H) projection when
    # V * 3 * Hp is too large to keep a precomputed table.
    tbl = params["embedding"] @ params["w_ih"].T + b_i[None, :]          # (V, 3H)

    ip_table = jnp.zeros((V, 3 * Hp), jnp.float32)
    wh_p = jnp.zeros((Hp, 3 * Hp), jnp.float32)
    for g in range(3):   # place each gate at a 128-lane-aligned slot
        ip_table = ip_table.at[:, g * Hp:g * Hp + H].set(tbl[:, g * H:(g + 1) * H])
        wh_p = wh_p.at[:H, g * Hp:g * Hp + H].set(params["w_hh"][g * H:(g + 1) * H, :].T)

    b_hn = jnp.zeros((1, Hp), jnp.float32).at[0, :H].set(b_hh[2 * H:])
    w1 = jnp.zeros((Hp, Fp), jnp.float32).at[:H, :F].set(params["w_out"].T)
    b1 = jnp.zeros((1, Fp), jnp.float32).at[0, :F].set(params["b_out"])
    w2 = jnp.zeros((Fp, Vp), jnp.float32).at[:F, :V].set(params["w_out2"].T)
    b2 = jnp.zeros((1, Vp), jnp.float32).at[0, :V].set(params["b_out2"])

    return {
        "ip_table": ip_table,                     # (V, 3Hp) f32 (gather, not matmul)
        "w_h": wh_p.astype(jnp.bfloat16),         # (Hp, 3Hp)
        "b_hn": b_hn,                             # (1, Hp) f32
        "w1": w1.astype(jnp.bfloat16),            # (Hp, Fp)
        "b1": b1,                                 # (1, Fp) f32
        "w2": w2.astype(jnp.bfloat16),            # (Fp, Vp)
        "b2": b2,                                 # (1, Vp) f32
    }


# ----------------------------------------------------------------------------
# Pure-JAX f32 reference (PyTorch semantics) for verification.
# ----------------------------------------------------------------------------
def reference_forward(x_tokens, hidden, params, hidden_size):
    H = hidden_size
    x_emb = params["embedding"][x_tokens]
    w_ih, w_hh, b_ih, b_hh = (params["w_ih"], params["w_hh"],
                              params["b_ih"], params["b_hh"])

    def step(h, x_t):
        gi = x_t @ w_ih.T + b_ih
        gh = h @ w_hh.T + b_hh
        r = jax.nn.sigmoid(gi[:, :H] + gh[:, :H])
        z = jax.nn.sigmoid(gi[:, H:2 * H] + gh[:, H:2 * H])
        n = jnp.tanh(gi[:, 2 * H:] + r * gh[:, 2 * H:])
        h_new = (1.0 - z) * n + z * h
        return h_new, h_new

    hT, o = jax.lax.scan(step, hidden[0], x_emb)
    h1 = jnp.maximum(o @ params["w_out"].T + params["b_out"], 0.0)
    logits = h1 @ params["w_out2"].T + params["b_out2"]
    return logits, hT[None, :, :]


if __name__ == "__main__":
    vocab_size, hidden_size, embedding_size, feature_size = 32, 32, 16, 128
    T, B = 8, 2

    key = jax.random.PRNGKey(0)
    k_par, k_tok, k_hid = jax.random.split(key, 3)

    params = init_params(k_par, vocab_size, hidden_size, embedding_size,
                         feature_size)
    prep = prepare_decoder_params(params, hidden_size)

    x_tokens = jax.random.randint(k_tok, (T, B), 0, vocab_size, dtype=jnp.int32)
    hidden = jax.random.normal(k_hid, (1, B, hidden_size), jnp.float32)

    logits, h_out = decoder_gru_forward(x_tokens, hidden, prep)
    jax.block_until_ready((logits, h_out))

    ref_logits, ref_h = reference_forward(x_tokens, hidden, params, hidden_size)
    assert logits.shape == (T, B, vocab_size)
    assert h_out.shape == (1, B, hidden_size)
    # bf16 MXU operands (f32 accumulation / f32 h carry) vs. the pure-f32
    # reference -> compare with a bf16-appropriate tolerance.
    assert jnp.allclose(logits, ref_logits, atol=5e-2, rtol=5e-2), (
        "max |logits diff| = "
        + str(float(jnp.max(jnp.abs(logits - ref_logits)))))
    assert jnp.allclose(h_out, ref_h, atol=5e-2, rtol=5e-2), (
        "max |h diff| = " + str(float(jnp.max(jnp.abs(h_out - ref_h)))))

    print("KERNEL_OK")
</pallas_src>

<mosaic_0001>
module attributes {stable_mosaic.version = 11 : i64} {
  func.func @decoder_kernel(%arg0: i32, %arg1: i32, %arg2: i32, %arg3: memref<8x8x384xf32, #tpu.memory_space<vmem>>, %arg4: memref<8x128xf32, #tpu.memory_space<vmem>>, %arg5: memref<128x384xbf16, #tpu.memory_space<vmem>>, %arg6: memref<1x128xf32, #tpu.memory_space<vmem>>, %arg7: memref<128x128xbf16, #tpu.memory_space<vmem>>, %arg8: memref<1x128xf32, #tpu.memory_space<vmem>>, %arg9: memref<128x128xbf16, #tpu.memory_space<vmem>>, %arg10: memref<1x128xf32, #tpu.memory_space<vmem>>, %arg11: memref<8x8x128xf32, #tpu.memory_space<vmem>>, %arg12: memref<8x128xf32, #tpu.memory_space<vmem>>, %arg13: memref<8x128xf32, #tpu.memory_space<vmem>>, %arg14: memref<8x8x128xf32, #tpu.memory_space<vmem>>, %arg15: memref<64x128xf32, #tpu.memory_space<vmem>>) attributes {dimension_semantics = [#tpu.dimension_semantics<parallel>, #tpu.dimension_semantics<arbitrary>, #tpu.dimension_semantics<arbitrary>], iteration_bounds = array<i64: 1, 1, 1>, scalar_prefetch = 0 : i64, scratch_operands = 3 : i64, tpu.core_type = #tpu.core_type<tc>, window_params = [{transform_indices = @transform_0, window_bounds = array<i64: 8, 8, 384>}, {transform_indices = @transform_1, window_bounds = array<i64: 8, 128>}, {pipeline_mode = #tpu.pipeline_mode<synchronous>, transform_indices = @transform_2, window_bounds = array<i64: 128, 384>}, {pipeline_mode = #tpu.pipeline_mode<synchronous>, transform_indices = @transform_3, window_bounds = array<i64: 1, 128>}, {pipeline_mode = #tpu.pipeline_mode<synchronous>, transform_indices = @transform_4, window_bounds = array<i64: 128, 128>}, {pipeline_mode = #tpu.pipeline_mode<synchronous>, transform_indices = @transform_5, window_bounds = array<i64: 1, 128>}, {transform_indices = @transform_6, window_bounds = array<i64: 128, 128>}, {transform_indices = @transform_7, window_bounds = array<i64: 1, 128>}, {transform_indices = @transform_8, window_bounds = array<i64: 8, 8, 128>}, {transform_indices = @transform_9, window_bounds = array<i64: 8, 128>}]} {
    %c0_i32 = arith.constant 0 : i32
    %0 = arith.cmpi eq, %arg1, %c0_i32 : i32
    %c0_i32_0 = arith.constant 0 : i32
    %1 = arith.cmpi eq, %arg2, %c0_i32_0 : i32
    %2 = arith.andi %0, %1 : i1
    %3 = arith.extui %2 : i1 to i32
    %c0_i32_1 = arith.constant 0 : i32
    %4 = arith.cmpi ne, %3, %c0_i32_1 : i32
    scf.if %4 {
      %c0_12 = arith.constant 0 : index
      %c0_13 = arith.constant 0 : index
      %17 = vector.load %arg4[%c0_12, %c0_13] : memref<8x128xf32, #tpu.memory_space<vmem>>, vector<8x128xf32>
      %c0_14 = arith.constant 0 : index
      %c0_15 = arith.constant 0 : index
      %18 = vector.load %arg13[%c0_14, %c0_15] : memref<8x128xf32, #tpu.memory_space<vmem>>, vector<8x128xf32>
      tpu.vector_store %arg13[%c0_14, %c0_15], %17 {strides = array<i32>} : memref<8x128xf32, #tpu.memory_space<vmem>>, vector<8x128xf32>,
    } else {
    }
    %c0_i32_2 = arith.constant 0 : i32
    %5 = arith.cmpi eq, %arg2, %c0_i32_2 : i32
    %6 = arith.extui %5 : i1 to i32
    %c0_i32_3 = arith.constant 0 : i32
    %7 = arith.cmpi ne, %6, %c0_i32_3 : i32
    scf.if %7 {
      %c0_12 = arith.constant 0 : index
      %c0_13 = arith.constant 0 : index
      %17 = vector.load %arg5[%c0_12, %c0_13] : memref<128x384xbf16, #tpu.memory_space<vmem>>, vector<128x384xbf16>
      %c0_14 = arith.constant 0 : index
      %c0_15 = arith.constant 0 : index
      %18 = vector.load %arg6[%c0_14, %c0_15] : memref<1x128xf32, #tpu.memory_space<vmem>>, vector<1x128xf32>
      %19 = vector.shape_cast %18 : vector<1x128xf32> to vector<1x128xf32>
      %20 = vector.broadcast %19 : vector<1x128xf32> to vector<8x128xf32>
      %c0_16 = arith.constant 0 : index
      %c0_17 = arith.constant 0 : index
      %21 = vector.load %arg13[%c0_16, %c0_17] : memref<8x128xf32, #tpu.memory_space<vmem>>, vector<8x128xf32>
      %c0_i32_18 = arith.constant 0 : i32
      %22 = arith.index_cast %c0_i32_18 : i32 to index
      %c0_19 = arith.constant 0 : index
      %c0_20 = arith.constant 0 : index
      %23 = vector.load %arg3[%22, %c0_19, %c0_20] : memref<8x8x384xf32, #tpu.memory_space<vmem>>, vector<1x8x384xf32>
      %24 = vector.shape_cast %23 : vector<1x8x384xf32> to vector<8x384xf32>
      %25 = arith.truncf %21 : vector<8x128xf32> to vector<8x128xbf16>
      %cst_21 = arith.constant dense<0.000000e+00> : vector<8x384xf32>
      %26 = tpu.matmul %25, %17, %cst_21 {dimension_numbers = #tpu.dot_dimension_numbers<[1], [0], [0], [1], [0, 0, 1, 1], [], []>} : vector<8x128xbf16>, vector<128x384xbf16>, vector<8x384xf32> -> vector<8x384xf32>
      %27 = vector.extract_strided_slice %24 {offsets = [0, 0], sizes = [8, 128], strides = [1, 1]} : vector<8x384xf32> to vector<8x128xf32>
      %28 = vector.extract_strided_slice %26 {offsets = [0, 0], sizes = [8, 128], strides = [1, 1]} : vector<8x384xf32> to vector<8x128xf32>
      %29 = arith.addf %27, %28 : vector<8x128xf32>
      %30 = arith.negf %29 : vector<8x128xf32>
      %31 = math.exp %30 : vector<8x128xf32>
      %cst_22 = arith.constant 1.000000e+00 : f32
      %32 = vector.broadcast %cst_22 : f32 to vector<8x128xf32>
      %33 = arith.addf %32, %31 : vector<8x128xf32>
      %34 = arith.divf %32, %33 : vector<8x128xf32>
      %35 = vector.extract_strided_slice %24 {offsets = [0, 128], sizes = [8, 128], strides = [1, 1]} : vector<8x384xf32> to vector<8x128xf32>
      %36 = vector.extract_strided_slice %26 {offsets = [0, 128], sizes = [8, 128], strides = [1, 1]} : vector<8x384xf32> to vector<8x128xf32>
      %37 = arith.addf %35, %36 : vector<8x128xf32>
      %38 = arith.negf %37 : vector<8x128xf32>
      %39 = math.exp %38 : vector<8x128xf32>
      %cst_23 = arith.constant 1.000000e+00 : f32
      %40 = vector.broadcast %cst_23 : f32 to vector<8x128xf32>
      %41 = arith.addf %40, %39 : vector<8x128xf32>
      %42 = arith.divf %40, %41 : vector<8x128xf32>
      %43 = vector.extract_strided_slice %24 {offsets = [0, 256], sizes = [8, 128], strides = [1, 1]} : vector<8x384xf32> to vector<8x128xf32>
      %44 = vector.extract_strided_slice %26 {offsets = [0, 256], sizes = [8, 128], strides = [1, 1]} : vector<8x384xf32> to vector<8x128xf32>
      %45 = arith.addf %44, %20 : vector<8x128xf32>
      %46 = arith.mulf %34, %45 : vector<8x128xf32>
      %47 = arith.addf %43, %46 : vector<8x128xf32>
      %48 = math.tanh %47 : vector<8x128xf32>
      %49 = arith.subf %21, %48 : vector<8x128xf32>
      %50 = arith.mulf %42, %49 : vector<8x128xf32>
      %51 = arith.addf %48, %50 : vector<8x128xf32>
      %52 = arith.index_cast %c0_i32_18 : i32 to index
      %c0_24 = arith.constant 0 : index
      %c0_25 = arith.constant 0 : index
      %53 = vector.load %arg14[%52, %c0_24, %c0_25] : memref<8x8x128xf32, #tpu.memory_space<vmem>>, vector<1x8x128xf32>
      %54 = vector.shape_cast %53 : vector<1x8x128xf32> to vector<8x128xf32>
      %55 = vector.shape_cast %51 : vector<8x128xf32> to vector<1x8x128xf32>
      tpu.vector_store %arg14[%52, %c0_24, %c0_25], %55 {strides = array<i32>} : memref<8x8x128xf32, #tpu.memory_space<vmem>>, vector<1x8x128xf32>,
      %c1_i32 = arith.constant 1 : i32
      %56 = arith.index_cast %c1_i32 : i32 to index
      %c0_26 = arith.constant 0 : index
      %c0_27 = arith.constant 0 : index
      %57 = vector.load %arg3[%56, %c0_26, %c0_27] : memref<8x8x384xf32, #tpu.memory_space<vmem>>, vector<1x8x384xf32>
      %58 = vector.shape_cast %57 : vector<1x8x384xf32> to vector<8x384xf32>
      %59 = arith.truncf %51 : vector<8x128xf32> to vector<8x128xbf16>
      %cst_28 = arith.constant dense<0.000000e+00> : vector<8x384xf32>
      %60 = tpu.matmul %59, %17, %cst_28 {dimension_numbers = #tpu.dot_dimension_numbers<[1], [0], [0], [1], [0, 0, 1, 1], [], []>} : vector<8x128xbf16>, vector<128x384xbf16>, vector<8x384xf32> -> vector<8x384xf32>
      %61 = vector.extract_strided_slice %58 {offsets = [0, 0], sizes = [8, 128], strides = [1, 1]} : vector<8x384xf32> to vector<8x128xf32>
      %62 = vector.extract_strided_slice %60 {offsets = [0, 0], sizes = [8, 128], strides = [1, 1]} : vector<8x384xf32> to vector<8x128xf32>
      %63 = arith.addf %61, %62 : vector<8x128xf32>
      %64 = arith.negf %63 : vector<8x128xf32>
      %65 = math.exp %64 : vector<8x128xf32>
      %cst_29 = arith.constant 1.000000e+00 : f32
      %66 = vector.broadcast %cst_29 : f32 to vector<8x128xf32>
      %67 = arith.addf %66, %65 : vector<8x128xf32>
      %68 = arith.divf %66, %67 : vector<8x128xf32>
      %69 = vector.extract_strided_slice %58 {offsets = [0, 128], sizes = [8, 128], strides = [1, 1]} : vector<8x384xf32> to vector<8x128xf32>
      %70 = vector.extract_strided_slice %60 {offsets = [0, 128], sizes = [8, 128], strides = [1, 1]} : vector<8x384xf32> to vector<8x128xf32>
      %71 = arith.addf %69, %70 : vector<8x128xf32>
      %72 = arith.negf %71 : vector<8x128xf32>
      %73 = math.exp %72 : vector<8x128xf32>
      %cst_30 = arith.constant 1.000000e+00 : f32
      %74 = vector.broadcast %cst_30 : f32 to vector<8x128xf32>
      %75 = arith.addf %74, %73 : vector<8x128xf32>
      %76 = arith.divf %74, %75 : vector<8x128xf32>
      %77 = vector.extract_strided_slice %58 {offsets = [0, 256], sizes = [8, 128], strides = [1, 1]} : vector<8x384xf32> to vector<8x128xf32>
      %78 = vector.extract_strided_slice %60 {offsets = [0, 256], sizes = [8, 128], strides = [1, 1]} : vector<8x384xf32> to vector<8x128xf32>
      %79 = arith.addf %78, %20 : vector<8x128xf32>
      %80 = arith.mulf %68, %79 : vector<8x128xf32>
      %81 = arith.addf %77, %80 : vector<8x128xf32>
      %82 = math.tanh %81 : vector<8x128xf32>
      %83 = arith.subf %51, %82 : vector<8x128xf32>
      %84 = arith.mulf %76, %83 : vector<8x128xf32>
      %85 = arith.addf %82, %84 : vector<8x128xf32>
      %86 = arith.index_cast %c1_i32 : i32 to index
      %c0_31 = arith.constant 0 : index
      %c0_32 = arith.constant 0 : index
      %87 = vector.load %arg14[%86, %c0_31, %c0_32] : memref<8x8x128xf32, #tpu.memory_space<vmem>>, vector<1x8x128xf32>
      %88 = vector.shape_cast %87 : vector<1x8x128xf32> to vector<8x128xf32>
      %89 = vector.shape_cast %85 : vector<8x128xf32> to vector<1x8x128xf32>
      tpu.vector_store %arg14[%86, %c0_31, %c0_32], %89 {strides = array<i32>} : memref<8x8x128xf32, #tpu.memory_space<vmem>>, vector<1x8x128xf32>,
      %c2_i32 = arith.constant 2 : i32
      %90 = arith.index_cast %c2_i32 : i32 to index
      %c0_33 = arith.constant 0 : index
      %c0_34 = arith.constant 0 : index
      %91 = vector.load %arg3[%90, %c0_33, %c0_34] : memref<8x8x384xf32, #tpu.memory_space<vmem>>, vector<1x8x384xf32>
      %92 = vector.shape_cast %91 : vector<1x8x384xf32> to vector<8x384xf32>
      %93 = arith.truncf %85 : vector<8x128xf32> to vector<8x128xbf16>
      %cst_35 = arith.constant dense<0.000000e+00> : vector<8x384xf32>
      %94 = tpu.matmul %93, %17, %cst_35 {dimension_numbers = #tpu.dot_dimension_numbers<[1], [0], [0], [1], [0, 0, 1, 1], [], []>} : vector<8x128xbf16>, vector<128x384xbf16>, vector<8x384xf32> -> vector<8x384xf32>
      %95 = vector.extract_strided_slice %92 {offsets = [0, 0], sizes = [8, 128], strides = [1, 1]} : vector<8x384xf32> to vector<8x128xf32>
      %96 = vector.extract_strided_slice %94 {offsets = [0, 0], sizes = [8, 128], strides = [1, 1]} : vector<8x384xf32> to vector<8x128xf32>
      %97 = arith.addf %95, %96 : vector<8x128xf32>
      %98 = arith.negf %97 : vector<8x128xf32>
      %99 = math.exp %98 : vector<8x128xf32>
      %cst_36 = arith.constant 1.000000e+00 : f32
      %100 = vector.broadcast %cst_36 : f32 to vector<8x128xf32>
      %101 = arith.addf %100, %99 : vector<8x128xf32>
      %102 = arith.divf %100, %101 : vector<8x128xf32>
      %103 = vector.extract_strided_slice %92 {offsets = [0, 128], sizes = [8, 128], strides = [1, 1]} : vector<8x384xf32> to vector<8x128xf32>
      %104 = vector.extract_strided_slice %94 {offsets = [0, 128], sizes = [8, 128], strides = [1, 1]} : vector<8x384xf32> to vector<8x128xf32>
      %105 = arith.addf %103, %104 : vector<8x128xf32>
      %106 = arith.negf %105 : vector<8x128xf32>
      %107 = math.exp %106 : vector<8x128xf32>
      %cst_37 = arith.constant 1.000000e+00 : f32
      %108 = vector.broadcast %cst_37 : f32 to vector<8x128xf32>
      %109 = arith.addf %108, %107 : vector<8x128xf32>
      %110 = arith.divf %108, %109 : vector<8x128xf32>
      %111 = vector.extract_strided_slice %92 {offsets = [0, 256], sizes = [8, 128], strides = [1, 1]} : vector<8x384xf32> to vector<8x128xf32>
      %112 = vector.extract_strided_slice %94 {offsets = [0, 256], sizes = [8, 128], strides = [1, 1]} : vector<8x384xf32> to vector<8x128xf32>
      %113 = arith.addf %112, %20 : vector<8x128xf32>
      %114 = arith.mulf %102, %113 : vector<8x128xf32>
      %115 = arith.addf %111, %114 : vector<8x128xf32>
      %116 = math.tanh %115 : vector<8x128xf32>
      %117 = arith.subf %85, %116 : vector<8x128xf32>
      %118 = arith.mulf %110, %117 : vector<8x128xf32>
      %119 = arith.addf %116, %118 : vector<8x128xf32>
      %120 = arith.index_cast %c2_i32 : i32 to index
      %c0_38 = arith.constant 0 : index
      %c0_39 = arith.constant 0 : index
      %121 = vector.load %arg14[%120, %c0_38, %c0_39] : memref<8x8x128xf32, #tpu.memory_space<vmem>>, vector<1x8x128xf32>
      %122 = vector.shape_cast %121 : vector<1x8x128xf32> to vector<8x128xf32>
      %123 = vector.shape_cast %119 : vector<8x128xf32> to vector<1x8x128xf32>
      tpu.vector_store %arg14[%120, %c0_38, %c0_39], %123 {strides = array<i32>} : memref<8x8x128xf32, #tpu.memory_space<vmem>>, vector<1x8x128xf32>,
      %c3_i32 = arith.constant 3 : i32
      %124 = arith.index_cast %c3_i32 : i32 to index
      %c0_40 = arith.constant 0 : index
      %c0_41 = arith.constant 0 : index
      %125 = vector.load %arg3[%124, %c0_40, %c0_41] : memref<8x8x384xf32, #tpu.memory_space<vmem>>, vector<1x8x384xf32>
      %126 = vector.shape_cast %125 : vector<1x8x384xf32> to vector<8x384xf32>
      %127 = arith.truncf %119 : vector<8x128xf32> to vector<8x128xbf16>
      %cst_42 = arith.constant dense<0.000000e+00> : vector<8x384xf32>
      %128 = tpu.matmul %127, %17, %cst_42 {dimension_numbers = #tpu.dot_dimension_numbers<[1], [0], [0], [1], [0, 0, 1, 1], [], []>} : vector<8x128xbf16>, vector<128x384xbf16>, vector<8x384xf32> -> vector<8x384xf32>
      %129 = vector.extract_strided_slice %126 {offsets = [0, 0], sizes = [8, 128], strides = [1, 1]} : vector<8x384xf32> to vector<8x128xf32>
      %130 = vector.extract_strided_slice %128 {offsets = [0, 0], sizes = [8, 128], strides = [1, 1]} : vector<8x384xf32> to vector<8x128xf32>
      %131 = arith.addf %129, %130 : vector<8x128xf32>
      %132 = arith.negf %131 : vector<8x128xf32>
      %133 = math.exp %132 : vector<8x128xf32>
      %cst_43 = arith.constant 1.000000e+00 : f32
      %134 = vector.broadcast %cst_43 : f32 to vector<8x128xf32>
      %135 = arith.addf %134, %133 : vector<8x128xf32>
      %136 = arith.divf %134, %135 : vector<8x128xf32>
      %137 = vector.extract_strided_slice %126 {offsets = [0, 128], sizes = [8, 128], strides = [1, 1]} : vector<8x384xf32> to vector<8x128xf32>
      %138 = vector.extract_strided_slice %128 {offsets = [0, 128], sizes = [8, 128], strides = [1, 1]} : vector<8x384xf32> to vector<8x128xf32>
      %139 = arith.addf %137, %138 : vector<8x128xf32>
      %140 = arith.negf %139 : vector<8x128xf32>
      %141 = math.exp %140 : vector<8x128xf32>
      %cst_44 = arith.constant 1.000000e+00 : f32
      %142 = vector.broadcast %cst_44 : f32 to vector<8x128xf32>
      %143 = arith.addf %142, %141 : vector<8x128xf32>
      %144 = arith.divf %142, %143 : vector<8x128xf32>
      %145 = vector.extract_strided_slice %126 {offsets = [0, 256], sizes = [8, 128], strides = [1, 1]} : vector<8x384xf32> to vector<8x128xf32>
      %146 = vector.extract_strided_slice %128 {offsets = [0, 256], sizes = [8, 128], strides = [1, 1]} : vector<8x384xf32> to vector<8x128xf32>
      %147 = arith.addf %146, %20 : vector<8x128xf32>
      %148 = arith.mulf %136, %147 : vector<8x128xf32>
      %149 = arith.addf %145, %148 : vector<8x128xf32>
      %150 = math.tanh %149 : vector<8x128xf32>
      %151 = arith.subf %119, %150 : vector<8x128xf32>
      %152 = arith.mulf %144, %151 : vector<8x128xf32>
      %153 = arith.addf %150, %152 : vector<8x128xf32>
      %154 = arith.index_cast %c3_i32 : i32 to index
      %c0_45 = arith.constant 0 : index
      %c0_46 = arith.constant 0 : index
      %155 = vector.load %arg14[%154, %c0_45, %c0_46] : memref<8x8x128xf32, #tpu.memory_space<vmem>>, vector<1x8x128xf32>
      %156 = vector.shape_cast %155 : vector<1x8x128xf32> to vector<8x128xf32>
      %157 = vector.shape_cast %153 : vector<8x128xf32> to vector<1x8x128xf32>
      tpu.vector_store %arg14[%154, %c0_45, %c0_46], %157 {strides = array<i32>} : memref<8x8x128xf32, #tpu.memory_space<vmem>>, vector<1x8x128xf32>,
      %c4_i32 = arith.constant 4 : i32
      %158 = arith.index_cast %c4_i32 : i32 to index
      %c0_47 = arith.constant 0 : index
      %c0_48 = arith.constant 0 : index
      %159 = vector.load %arg3[%158, %c0_47, %c0_48] : memref<8x8x384xf32, #tpu.memory_space<vmem>>, vector<1x8x384xf32>
      %160 = vector.shape_cast %159 : vector<1x8x384xf32> to vector<8x384xf32>
      %161 = arith.truncf %153 : vector<8x128xf32> to vector<8x128xbf16>
      %cst_49 = arith.constant dense<0.000000e+00> : vector<8x384xf32>
      %162 = tpu.matmul %161, %17, %cst_49 {dimension_numbers = #tpu.dot_dimension_numbers<[1], [0], [0], [1], [0, 0, 1, 1], [], []>} : vector<8x128xbf16>, vector<128x384xbf16>, vector<8x384xf32> -> vector<8x384xf32>
      %163 = vector.extract_strided_slice %160 {offsets = [0, 0], sizes = [8, 128], strides = [1, 1]} : vector<8x384xf32> to vector<8x128xf32>
      %164 = vector.extract_strided_slice %162 {offsets = [0, 0], sizes = [8, 128], strides = [1, 1]} : vector<8x384xf32> to vector<8x128xf32>
      %165 = arith.addf %163, %164 : vector<8x128xf32>
      %166 = arith.negf %165 : vector<8x128xf32>
      %167 = math.exp %166 : vector<8x128xf32>
      %cst_50 = arith.constant 1.000000e+00 : f32
      %168 = vector.broadcast %cst_50 : f32 to vector<8x128xf32>
      %169 = arith.addf %168, %167 : vector<8x128xf32>
      %170 = arith.divf %168, %169 : vector<8x128xf32>
      %171 = vector.extract_strided_slice %160 {offsets = [0, 128], sizes = [8, 128], strides = [1, 1]} : vector<8x384xf32> to vector<8x128xf32>
      %172 = vector.extract_strided_slice %162 {offsets = [0, 128], sizes = [8, 128], strides = [1, 1]} : vector<8x384xf32> to vector<8x128xf32>
      %173 = arith.addf %171, %172 : vector<8x128xf32>
      %174 = arith.negf %173 : vector<8x128xf32>
      %175 = math.exp %174 : vector<8x128xf32>
      %cst_51 = arith.constant 1.000000e+00 : f32
      %176 = vector.broadcast %cst_51 : f32 to vector<8x128xf32>
      %177 = arith.addf %176, %175 : vector<8x128xf32>
      %178 = arith.divf %176, %177 : vector<8x128xf32>
      %179 = vector.extract_strided_slice %160 {offsets = [0, 256], sizes = [8, 128], strides = [1, 1]} : vector<8x384xf32> to vector<8x128xf32>
      %180 = vector.extract_strided_slice %162 {offsets = [0, 256], sizes = [8, 128], strides = [1, 1]} : vector<8x384xf32> to vector<8x128xf32>
      %181 = arith.addf %180, %20 : vector<8x128xf32>
      %182 = arith.mulf %170, %181 : vector<8x128xf32>
      %183 = arith.addf %179, %182 : vector<8x128xf32>
      %184 = math.tanh %183 : vector<8x128xf32>
      %185 = arith.subf %153, %184 : vector<8x128xf32>
      %186 = arith.mulf %178, %185 : vector<8x128xf32>
      %187 = arith.addf %184, %186 : vector<8x128xf32>
      %188 = arith.index_cast %c4_i32 : i32 to index
      %c0_52 = arith.constant 0 : index
      %c0_53 = arith.constant 0 : index
      %189 = vector.load %arg14[%188, %c0_52, %c0_53] : memref<8x8x128xf32, #tpu.memory_space<vmem>>, vector<1x8x128xf32>
      %190 = vector.shape_cast %189 : vector<1x8x128xf32> to vector<8x128xf32>
      %191 = vector.shape_cast %187 : vector<8x128xf32> to vector<1x8x128xf32>
      tpu.vector_store %arg14[%188, %c0_52, %c0_53], %191 {strides = array<i32>} : memref<8x8x128xf32, #tpu.memory_space<vmem>>, vector<1x8x128xf32>,
      %c5_i32 = arith.constant 5 : i32
      %192 = arith.index_cast %c5_i32 : i32 to index
      %c0_54 = arith.constant 0 : index
      %c0_55 = arith.constant 0 : index
      %193 = vector.load %arg3[%192, %c0_54, %c0_55] : memref<8x8x384xf32, #tpu.memory_space<vmem>>, vector<1x8x384xf32>
      %194 = vector.shape_cast %193 : vector<1x8x384xf32> to vector<8x384xf32>
      %195 = arith.truncf %187 : vector<8x128xf32> to vector<8x128xbf16>
      %cst_56 = arith.constant dense<0.000000e+00> : vector<8x384xf32>
      %196 = tpu.matmul %195, %17, %cst_56 {dimension_numbers = #tpu.dot_dimension_numbers<[1], [0], [0], [1], [0, 0, 1, 1], [], []>} : vector<8x128xbf16>, vector<128x384xbf16>, vector<8x384xf32> -> vector<8x384xf32>
      %197 = vector.extract_strided_slice %194 {offsets = [0, 0], sizes = [8, 128], strides = [1, 1]} : vector<8x384xf32> to vector<8x128xf32>
      %198 = vector.extract_strided_slice %196 {offsets = [0, 0], sizes = [8, 128], strides = [1, 1]} : vector<8x384xf32> to vector<8x128xf32>
      %199 = arith.addf %197, %198 : vector<8x128xf32>
      %200 = arith.negf %199 : vector<8x128xf32>
      %201 = math.exp %200 : vector<8x128xf32>
      %cst_57 = arith.constant 1.000000e+00 : f32
      %202 = vector.broadcast %cst_57 : f32 to vector<8x128xf32>
      %203 = arith.addf %202, %201 : vector<8x128xf32>
      %204 = arith.divf %202, %203 : vector<8x128xf32>
      %205 = vector.extract_strided_slice %194 {offsets = [0, 128], sizes = [8, 128], strides = [1, 1]} : vector<8x384xf32> to vector<8x128xf32>
      %206 = vector.extract_strided_slice %196 {offsets = [0, 128], sizes = [8, 128], strides = [1, 1]} : vector<8x384xf32> to vector<8x128xf32>
      %207 = arith.addf %205, %206 : vector<8x128xf32>
      %208 = arith.negf %207 : vector<8x128xf32>
      %209 = math.exp %208 : vector<8x128xf32>
      %cst_58 = arith.constant 1.000000e+00 : f32
      %210 = vector.broadcast %cst_58 : f32 to vector<8x128xf32>
      %211 = arith.addf %210, %209 : vector<8x128xf32>
      %212 = arith.divf %210, %211 : vector<8x128xf32>
      %213 = vector.extract_strided_slice %194 {offsets = [0, 256], sizes = [8, 128], strides = [1, 1]} : vector<8x384xf32> to vector<8x128xf32>
      %214 = vector.extract_strided_slice %196 {offsets = [0, 256], sizes = [8, 128], strides = [1, 1]} : vector<8x384xf32> to vector<8x128xf32>
      %215 = arith.addf %214, %20 : vector<8x128xf32>
      %216 = arith.mulf %204, %215 : vector<8x128xf32>
      %217 = arith.addf %213, %216 : vector<8x128xf32>
      %218 = math.tanh %217 : vector<8x128xf32>
      %219 = arith.subf %187, %218 : vector<8x128xf32>
      %220 = arith.mulf %212, %219 : vector<8x128xf32>
      %221 = arith.addf %218, %220 : vector<8x128xf32>
      %222 = arith.index_cast %c5_i32 : i32 to index
      %c0_59 = arith.constant 0 : index
      %c0_60 = arith.constant 0 : index
      %223 = vector.load %arg14[%222, %c0_59, %c0_60] : memref<8x8x128xf32, #tpu.memory_space<vmem>>, vector<1x8x128xf32>
      %224 = vector.shape_cast %223 : vector<1x8x128xf32> to vector<8x128xf32>
      %225 = vector.shape_cast %221 : vector<8x128xf32> to vector<1x8x128xf32>
      tpu.vector_store %arg14[%222, %c0_59, %c0_60], %225 {strides = array<i32>} : memref<8x8x128xf32, #tpu.memory_space<vmem>>, vector<1x8x128xf32>,
      %c6_i32 = arith.constant 6 : i32
      %226 = arith.index_cast %c6_i32 : i32 to index
      %c0_61 = arith.constant 0 : index
      %c0_62 = arith.constant 0 : index
      %227 = vector.load %arg3[%226, %c0_61, %c0_62] : memref<8x8x384xf32, #tpu.memory_space<vmem>>, vector<1x8x384xf32>
      %228 = vector.shape_cast %227 : vector<1x8x384xf32> to vector<8x384xf32>
      %229 = arith.truncf %221 : vector<8x128xf32> to vector<8x128xbf16>
      %cst_63 = arith.constant dense<0.000000e+00> : vector<8x384xf32>
      %230 = tpu.matmul %229, %17, %cst_63 {dimension_numbers = #tpu.dot_dimension_numbers<[1], [0], [0], [1], [0, 0, 1, 1], [], []>} : vector<8x128xbf16>, vector<128x384xbf16>, vector<8x384xf32> -> vector<8x384xf32>
      %231 = vector.extract_strided_slice %228 {offsets = [0, 0], sizes = [8, 128], strides = [1, 1]} : vector<8x384xf32> to vector<8x128xf32>
      %232 = vector.extract_strided_slice %230 {offsets = [0, 0], sizes = [8, 128], strides = [1, 1]} : vector<8x384xf32> to vector<8x128xf32>
      %233 = arith.addf %231, %232 : vector<8x128xf32>
      %234 = arith.negf %233 : vector<8x128xf32>
      %235 = math.exp %234 : vector<8x128xf32>
      %cst_64 = arith.constant 1.000000e+00 : f32
      %236 = vector.broadcast %cst_64 : f32 to vector<8x128xf32>
      %237 = arith.addf %236, %235 : vector<8x128xf32>
      %238 = arith.divf %236, %237 : vector<8x128xf32>
      %239 = vector.extract_strided_slice %228 {offsets = [0, 128], sizes = [8, 128], strides = [1, 1]} : vector<8x384xf32> to vector<8x128xf32>
      %240 = vector.extract_strided_slice %230 {offsets = [0, 128], sizes = [8, 128], strides = [1, 1]} : vector<8x384xf32> to vector<8x128xf32>
      %241 = arith.addf %239, %240 : vector<8x128xf32>
      %242 = arith.negf %241 : vector<8x128xf32>
      %243 = math.exp %242 : vector<8x128xf32>
      %cst_65 = arith.constant 1.000000e+00 : f32
      %244 = vector.broadcast %cst_65 : f32 to vector<8x128xf32>
      %245 = arith.addf %244, %243 : vector<8x128xf32>
      %246 = arith.divf %244, %245 : vector<8x128xf32>
      %247 = vector.extract_strided_slice %228 {offsets = [0, 256], sizes = [8, 128], strides = [1, 1]} : vector<8x384xf32> to vector<8x128xf32>
      %248 = vector.extract_strided_slice %230 {offsets = [0, 256], sizes = [8, 128], strides = [1, 1]} : vector<8x384xf32> to vector<8x128xf32>
      %249 = arith.addf %248, %20 : vector<8x128xf32>
      %250 = arith.mulf %238, %249 : vector<8x128xf32>
      %251 = arith.addf %247, %250 : vector<8x128xf32>
      %252 = math.tanh %251 : vector<8x128xf32>
      %253 = arith.subf %221, %252 : vector<8x128xf32>
      %254 = arith.mulf %246, %253 : vector<8x128xf32>
      %255 = arith.addf %252, %254 : vector<8x128xf32>
      %256 = arith.index_cast %c6_i32 : i32 to index
      %c0_66 = arith.constant 0 : index
      %c0_67 = arith.constant 0 : index
      %257 = vector.load %arg14[%256, %c0_66, %c0_67] : memref<8x8x128xf32, #tpu.memory_space<vmem>>, vector<1x8x128xf32>
      %258 = vector.shape_cast %257 : vector<1x8x128xf32> to vector<8x128xf32>
      %259 = vector.shape_cast %255 : vector<8x128xf32> to vector<1x8x128xf32>
      tpu.vector_store %arg14[%256, %c0_66, %c0_67], %259 {strides = array<i32>} : memref<8x8x128xf32, #tpu.memory_space<vmem>>, vector<1x8x128xf32>,
      %c7_i32 = arith.constant 7 : i32
      %260 = arith.index_cast %c7_i32 : i32 to index
      %c0_68 = arith.constant 0 : index
      %c0_69 = arith.constant 0 : index
      %261 = vector.load %arg3[%260, %c0_68, %c0_69] : memref<8x8x384xf32, #tpu.memory_space<vmem>>, vector<1x8x384xf32>
      %262 = vector.shape_cast %261 : vector<1x8x384xf32> to vector<8x384xf32>
      %263 = arith.truncf %255 : vector<8x128xf32> to vector<8x128xbf16>
      %cst_70 = arith.constant dense<0.000000e+00> : vector<8x384xf32>
      %264 = tpu.matmul %263, %17, %cst_70 {dimension_numbers = #tpu.dot_dimension_numbers<[1], [0], [0], [1], [0, 0, 1, 1], [], []>} : vector<8x128xbf16>, vector<128x384xbf16>, vector<8x384xf32> -> vector<8x384xf32>
      %265 = vector.extract_strided_slice %262 {offsets = [0, 0], sizes = [8, 128], strides = [1, 1]} : vector<8x384xf32> to vector<8x128xf32>
      %266 = vector.extract_strided_slice %264 {offsets = [0, 0], sizes = [8, 128], strides = [1, 1]} : vector<8x384xf32> to vector<8x128xf32>
      %267 = arith.addf %265, %266 : vector<8x128xf32>
      %268 = arith.negf %267 : vector<8x128xf32>
      %269 = math.exp %268 : vector<8x128xf32>
      %cst_71 = arith.constant 1.000000e+00 : f32
      %270 = vector.broadcast %cst_71 : f32 to vector<8x128xf32>
      %271 = arith.addf %270, %269 : vector<8x128xf32>
      %272 = arith.divf %270, %271 : vector<8x128xf32>
      %273 = vector.extract_strided_slice %262 {offsets = [0, 128], sizes = [8, 128], strides = [1, 1]} : vector<8x384xf32> to vector<8x128xf32>
      %274 = vector.extract_strided_slice %264 {offsets = [0, 128], sizes = [8, 128], strides = [1, 1]} : vector<8x384xf32> to vector<8x128xf32>
      %275 = arith.addf %273, %274 : vector<8x128xf32>
      %276 = arith.negf %275 : vector<8x128xf32>
      %277 = math.exp %276 : vector<8x128xf32>
      %cst_72 = arith.constant 1.000000e+00 : f32
      %278 = vector.broadcast %cst_72 : f32 to vector<8x128xf32>
      %279 = arith.addf %278, %277 : vector<8x128xf32>
      %280 = arith.divf %278, %279 : vector<8x128xf32>
      %281 = vector.extract_strided_slice %262 {offsets = [0, 256], sizes = [8, 128], strides = [1, 1]} : vector<8x384xf32> to vector<8x128xf32>
      %282 = vector.extract_strided_slice %264 {offsets = [0, 256], sizes = [8, 128], strides = [1, 1]} : vector<8x384xf32> to vector<8x128xf32>
      %283 = arith.addf %282, %20 : vector<8x128xf32>
      %284 = arith.mulf %272, %283 : vector<8x128xf32>
      %285 = arith.addf %281, %284 : vector<8x128xf32>
      %286 = math.tanh %285 : vector<8x128xf32>
      %287 = arith.subf %255, %286 : vector<8x128xf32>
      %288 = arith.mulf %280, %287 : vector<8x128xf32>
      %289 = arith.addf %286, %288 : vector<8x128xf32>
      %290 = arith.index_cast %c7_i32 : i32 to index
      %c0_73 = arith.constant 0 : index
      %c0_74 = arith.constant 0 : index
      %291 = vector.load %arg14[%290, %c0_73, %c0_74] : memref<8x8x128xf32, #tpu.memory_space<vmem>>, vector<1x8x128xf32>
      %292 = vector.shape_cast %291 : vector<1x8x128xf32> to vector<8x128xf32>
      %293 = vector.shape_cast %289 : vector<8x128xf32> to vector<1x8x128xf32>
      tpu.vector_store %arg14[%290, %c0_73, %c0_74], %293 {strides = array<i32>} : memref<8x8x128xf32, #tpu.memory_space<vmem>>, vector<1x8x128xf32>,
      %c8_i32 = arith.constant 8 : i32
      %c0_75 = arith.constant 0 : index
      %c0_76 = arith.constant 0 : index
      %294 = vector.load %arg13[%c0_75, %c0_76] : memref<8x128xf32, #tpu.memory_space<vmem>>, vector<8x128xf32>
      tpu.vector_store %arg13[%c0_75, %c0_76], %289 {strides = array<i32>} : memref<8x128xf32, #tpu.memory_space<vmem>>, vector<8x128xf32>,
      %c0_i32_77 = arith.constant 0 : i32
      %295 = arith.cmpi eq, %arg1, %c0_i32_77 : i32
      %296 = arith.extui %295 : i1 to i32
      %c0_i32_78 = arith.constant 0 : i32
      %297 = arith.cmpi ne, %296, %c0_i32_78 : i32
      scf.if %297 {
        %c0_90 = arith.constant 0 : index
        %c0_91 = arith.constant 0 : index
        %309 = vector.load %arg12[%c0_90, %c0_91] : memref<8x128xf32, #tpu.memory_space<vmem>>, vector<8x128xf32>
        tpu.vector_store %arg12[%c0_90, %c0_91], %289 {strides = array<i32>} : memref<8x128xf32, #tpu.memory_space<vmem>>, vector<8x128xf32>,
      } else {
      }
      %c0_79 = arith.constant 0 : index
      %c0_80 = arith.constant 0 : index
      %c0_81 = arith.constant 0 : index
      %298 = vector.load %arg14[%c0_79, %c0_80, %c0_81] : memref<8x8x128xf32, #tpu.memory_space<vmem>>, vector<8x8x128xf32>
      %299 = vector.shape_cast %298 : vector<8x8x128xf32> to vector<64x128xf32>
      %300 = arith.truncf %299 : vector<64x128xf32> to vector<64x128xbf16>
      %c0_82 = arith.constant 0 : index
      %c0_83 = arith.constant 0 : index
      %301 = vector.load %arg7[%c0_82, %c0_83] : memref<128x128xbf16, #tpu.memory_space<vmem>>, vector<128x128xbf16>
      %cst_84 = arith.constant dense<0.000000e+00> : vector<64x128xf32>
      %302 = tpu.matmul %300, %301, %cst_84 {dimension_numbers = #tpu.dot_dimension_numbers<[1], [0], [0], [1], [0, 0, 1, 1], [], []>} : vector<64x128xbf16>, vector<128x128xbf16>, vector<64x128xf32> -> vector<64x128xf32>
      %c0_85 = arith.constant 0 : index
      %c0_86 = arith.constant 0 : index
      %303 = vector.load %arg8[%c0_85, %c0_86] : memref<1x128xf32, #tpu.memory_space<vmem>>, vector<1x128xf32>
      %304 = vector.broadcast %303 : vector<1x128xf32> to vector<64x128xf32>
      %305 = arith.addf %302, %304 : vector<64x128xf32>
      %cst_87 = arith.constant 0.000000e+00 : f32
      %306 = vector.broadcast %cst_87 : f32 to vector<64x128xf32>
      %307 = arith.maximumf %305, %306 : vector<64x128xf32>
      %c0_88 = arith.constant 0 : index
      %c0_89 = arith.constant 0 : index
      %308 = vector.load %arg15[%c0_88, %c0_89] : memref<64x128xf32, #tpu.memory_space<vmem>>, vector<64x128xf32>
      tpu.vector_store %arg15[%c0_88, %c0_89], %307 {strides = array<i32>} : memref<64x128xf32, #tpu.memory_space<vmem>>, vector<64x128xf32>,
    } else {
    }
    %c0 = arith.constant 0 : index
    %c0_4 = arith.constant 0 : index
    %8 = vector.load %arg15[%c0, %c0_4] : memref<64x128xf32, #tpu.memory_space<vmem>>, vector<64x128xf32>
    %9 = arith.truncf %8 : vector<64x128xf32> to vector<64x128xbf16>
    %c0_5 = arith.constant 0 : index
    %c0_6 = arith.constant 0 : index
    %10 = vector.load %arg9[%c0_5, %c0_6] : memref<128x128xbf16, #tpu.memory_space<vmem>>, vector<128x128xbf16>
    %cst = arith.constant dense<0.000000e+00> : vector<64x128xf32>
    %11 = tpu.matmul %9, %10, %cst {dimension_numbers = #tpu.dot_dimension_numbers<[1], [0], [0], [1], [0, 0, 1, 1], [], []>} : vector<64x128xbf16>, vector<128x128xbf16>, vector<64x128xf32> -> vector<64x128xf32>
    %c0_7 = arith.constant 0 : index
    %c0_8 = arith.constant 0 : index
    %12 = vector.load %arg10[%c0_7, %c0_8] : memref<1x128xf32, #tpu.memory_space<vmem>>, vector<1x128xf32>
    %13 = vector.broadcast %12 : vector<1x128xf32> to vector<64x128xf32>
    %14 = arith.addf %11, %13 : vector<64x128xf32>
    %15 = vector.shape_cast %14 : vector<64x128xf32> to vector<8x8x128xf32>
    %c0_9 = arith.constant 0 : index
    %c0_10 = arith.constant 0 : index
    %c0_11 = arith.constant 0 : index
    %16 = vector.load %arg11[%c0_9, %c0_10, %c0_11] : memref<8x8x128xf32, #tpu.memory_space<vmem>>, vector<8x8x128xf32>
    tpu.vector_store %arg11[%c0_9, %c0_10, %c0_11], %15 {strides = array<i32>} : memref<8x8x128xf32, #tpu.memory_space<vmem>>, vector<8x8x128xf32>,
    return
  }
  func.func @transform_0(%arg0: i32, %arg1: i32, %arg2: i32) -> (i32, i32, i32) {
    %c0_i32 = arith.constant 0 : i32
    %c0_i32_0 = arith.constant 0 : i32
    return %arg1, %arg0, %c0_i32 : i32, i32, i32
  }
  func.func @transform_1(%arg0: i32, %arg1: i32, %arg2: i32) -> (i32, i32) {
    %c0_i32 = arith.constant 0 : i32
    %c0_i32_0 = arith.constant 0 : i32
    return %arg0, %c0_i32 : i32, i32
  }
  func.func @transform_2(%arg0: i32, %arg1: i32, %arg2: i32) -> (i32, i32) {
    %c0_i32 = arith.constant 0 : i32
    %c0_i32_0 = arith.constant 0 : i32
    %c0_i32_1 = arith.constant 0 : i32
    return %c0_i32, %c0_i32_0 : i32, i32
  }
  func.func @transform_3(%arg0: i32, %arg1: i32, %arg2: i32) -> (i32, i32) {
    %c0_i32 = arith.constant 0 : i32
    %c0_i32_0 = arith.constant 0 : i32
    %c0_i32_1 = arith.constant 0 : i32
    return %c0_i32, %c0_i32_0 : i32, i32
  }
  func.func @transform_4(%arg0: i32, %arg1: i32, %arg2: i32) -> (i32, i32) {
    %c0_i32 = arith.constant 0 : i32
    %c0_i32_0 = arith.constant 0 : i32
    %c0_i32_1 = arith.constant 0 : i32
    return %c0_i32, %c0_i32_0 : i32, i32
  }
  func.func @transform_5(%arg0: i32, %arg1: i32, %arg2: i32) -> (i32, i32) {
    %c0_i32 = arith.constant 0 : i32
    %c0_i32_0 = arith.constant 0 : i32
    %c0_i32_1 = arith.constant 0 : i32
    return %c0_i32, %c0_i32_0 : i32, i32
  }
  func.func @transform_6(%arg0: i32, %arg1: i32, %arg2: i32) -> (i32, i32) {
    %c0_i32 = arith.constant 0 : i32
    %c0_i32_0 = arith.constant 0 : i32
    return %c0_i32, %arg2 : i32, i32
  }
  func.func @transform_7(%arg0: i32, %arg1: i32, %arg2: i32) -> (i32, i32) {
    %c0_i32 = arith.constant 0 : i32
    %c0_i32_0 = arith.constant 0 : i32
    return %c0_i32, %arg2 : i32, i32
  }
  func.func @transform_8(%arg0: i32, %arg1: i32, %arg2: i32) -> (i32, i32, i32) {
    %c0_i32 = arith.constant 0 : i32
    return %arg1, %arg0, %arg2 : i32, i32, i32
  }
  func.func @transform_9(%arg0: i32, %arg1: i32, %arg2: i32) -> (i32, i32) {
    %c0_i32 = arith.constant 0 : i32
    %c0_i32_0 = arith.constant 0 : i32
    return %arg0, %c0_i32 : i32, i32
  }
}

</mosaic_0001>

<bundles_post_ra>
// kernel: decoder_forward_pallas.1
= control target key start
LH: loop header
LB: loop body
LE: loop exit
PB: predicated region body
PF: predicated region fallthrough
CT: control target
= control target key end

     0   :  { %s2200_s2 = inlined_call_operand.vmem [shape: bf16[128,384], index: 2, kind: input, shape index: {}]   ;;  %s2201_s1 = inlined_call_operand.vmem [shape: f32[8,128], index: 1, kind: input, shape index: {}]   ;;  %s2202_s3 = inlined_call_operand.vmem [shape: f32[1,128], index: 3, kind: input, shape index: {}]   ;;  %s2203_s0 = inlined_call_operand.vmem [shape: f32[8,8,384], index: 0, kind: input, shape index: {}]   ;;  %s2204_s4 = inlined_call_operand.vmem [shape: bf16[128,128], index: 4, kind: input, shape index: {}]   ;;  %s2205_s5 = inlined_call_operand.vmem [shape: f32[1,128], index: 5, kind: input, shape index: {}]   ;;  %s2206_s6 = inlined_call_operand.vmem [shape: bf16[128,128], index: 6, kind: input, shape index: {}]   ;;  %s2207_s7 = inlined_call_operand.vmem [shape: f32[1,128], index: 7, kind: input, shape index: {}]   ;;  %s2208_s8 = inlined_call_operand.vmem [shape: f32[8,8,128], index: 8, kind: output, shape index: {0}]   ;;  %s2209_s9 = inlined_call_operand.vmem [shape: f32[8,128], index: 9, kind: output, shape index: {1}]  }
   0x1   :  { %v1290_v0 = vld [vmem:[%s2200_s2 + $0xa8] sm:$0xf]  ;;  %v1423_v1 = vld [vmem:[%s2200_s2 + $0xb0] sm:$0xf0]  ;;  %v1422_v2 = vld [vmem:[%s2200_s2 + $0xac] sm:$0xf] }
   0x2   :  { %v1584_v3 = vor.u32 %v1423_v1, %v1290_v0  ;;  %v1292_v4 = vld [vmem:[%s2200_s2 + $0xb4] sm:$0xf0]  ;;  %v1278_v5 = vld [vmem:[%s2200_s2 + $0x90] sm:$0xf]  ;;  %v1420_v6 = vld [vmem:[%s2200_s2 + $0x98] sm:$0xf0] }
   0x3   :  { %v1595_v7 = vor.u32 %v1422_v2, %v1292_v4  ;;  %v1419_v8 = vld [vmem:[%s2200_s2 + $0x94] sm:$0xf]  ;;  %v1280_v9 = vld [vmem:[%s2200_s2 + $0x9c] sm:$0xf0]  ;;  %v1604_v10 = vor.u32 %v1420_v6, %v1278_v5  ;;  %v1266_v12 = vld [vmem:[%s2200_s2 + $0x78] sm:$0xf] }
   0x4   :  { %211 = vmatpush.bf16.msra.mxu2 %v1584_v3  ;;  %v1607_v11 = vor.u32 %v1419_v8, %v1280_v9  ;;  %v1417_v13 = vld [vmem:[%s2200_s2 + $0x80] sm:$0xf0]  ;;  %v1416_v14 = vld [vmem:[%s2200_s2 + $0x7c] sm:$0xf]  ;;  %v1268_v15 = vld [vmem:[%s2200_s2 + $0x84] sm:$0xf0] }
   0x5   :  { %224 = vmatpush.bf16.msra.mxu3 %v1595_v7  ;;  %316 = vmatpush.bf16.msra.mxu0 %v1595_v7  ;;  %v1623_v16 = vor.u32 %v1417_v13, %v1266_v12  ;;  %v1626_v17 = vor.u32 %v1416_v14, %v1268_v15  ;;  %v1254_v18 = vld [vmem:[%s2200_s2 + $0x60] sm:$0xf]  ;;  %v1414_v19 = vld [vmem:[%s2200_s2 + $0x68] sm:$0xf0]  ;;  %v1413_v20 = vld [vmem:[%s2200_s2 + $0x64] sm:$0xf] }
   0x6   :  { %v1256_v21 = vld [vmem:[%s2200_s2 + $0x6c] sm:$0xf0]  ;;  %v1645_v23 = vor.u32 %v1414_v19, %v1254_v18  ;;  %v1424_v24 = vld [vmem:[%s2200_s2 + $0xb8] sm:$0xf0]  ;;  %v1242_v26 = vld [vmem:[%s2200_s2 + $0x48] sm:$0xf] }
   0x7   :  { %v1298_v22 = vld [vmem:[%s2200_s2 + $0xb0] sm:$0xf]  ;;  %v1651_v25 = vor.u32 %v1413_v20, %v1256_v21  ;;  %v1411_v27 = vld [vmem:[%s2200_s2 + $0x50] sm:$0xf0]  ;;  %v1410_v28 = vld [vmem:[%s2200_s2 + $0x4c] sm:$0xf] }
   0x8   :  { %212 = vmatpush.bf16.msra.mxu2 %v1604_v10  ;;  %v1662_v29 = vor.u32 %v1424_v24, %v1298_v22  ;;  %v1244_v30 = vld [vmem:[%s2200_s2 + $0x54] sm:$0xf0]  ;;  %v1421_v32 = vld [vmem:[%s2200_s2 + $0xa0] sm:$0xf0]  ;;  %v1676_v33 = vor.u32 %v1411_v27, %v1242_v26  ;;  %v1230_v35 = vld [vmem:[%s2200_s2 + $0x30] sm:$0xf] }
   0x9   :  { %225 = vmatpush.bf16.msra.mxu3 %v1607_v11  ;;  %317 = vmatpush.bf16.msra.mxu0 %v1607_v11  ;;  %v1286_v31 = vld [vmem:[%s2200_s2 + $0x98] sm:$0xf]  ;;  %v1679_v34 = vor.u32 %v1410_v28, %v1244_v30  ;;  %v1408_v36 = vld [vmem:[%s2200_s2 + $0x38] sm:$0xf0]  ;;  %v1407_v37 = vld [vmem:[%s2200_s2 + $0x34] sm:$0xf] }
   0xa   :  { %329 = vmatpush.bf16.msra.mxu1 %v1662_v29  ;;  %v1690_v38 = vor.u32 %v1421_v32, %v1286_v31  ;;  %v1232_v39 = vld [vmem:[%s2200_s2 + $0x3c] sm:$0xf0]  ;;  %v1418_v41 = vld [vmem:[%s2200_s2 + $0x88] sm:$0xf0]  ;;  %v1704_v42 = vor.u32 %v1408_v36, %v1230_v35  ;;  %v1218_v44 = vld [vmem:[%s2200_s2 + $0x18] sm:$0xf] }
   0xb   :  { %v1274_v40 = vld [vmem:[%s2200_s2 + $0x80] sm:$0xf]  ;;  %v1707_v43 = vor.u32 %v1407_v37, %v1232_v39  ;;  %v1405_v45 = vld [vmem:[%s2200_s2 + $0x20] sm:$0xf0]  ;;  %v1404_v46 = vld [vmem:[%s2200_s2 + $0x1c] sm:$0xf] }
   0xc   :  { %213 = vmatpush.bf16.msra.mxu2 %v1623_v16  ;;  %v1718_v47 = vor.u32 %v1418_v41, %v1274_v40  ;;  %v1220_v48 = vld [vmem:[%s2200_s2 + $0x24] sm:$0xf0]  ;;  %v1415_v50 = vld [vmem:[%s2200_s2 + $0x70] sm:$0xf0]  ;;  %v1732_v51 = vor.u32 %v1405_v45, %v1218_v44  ;;  %v1206_v53 = vld [vmem:[%s2200_s2] sm:$0xf] }
   0xd   :  { %226 = vmatpush.bf16.msra.mxu3 %v1626_v17  ;;  %318 = vmatpush.bf16.msra.mxu0 %v1626_v17  ;;  %v1262_v49 = vld [vmem:[%s2200_s2 + $0x68] sm:$0xf]  ;;  %v1735_v52 = vor.u32 %v1404_v46, %v1220_v48  ;;  %v1402_v54 = vld [vmem:[%s2200_s2 + $0x8] sm:$0xf0]  ;;  %v1401_v55 = vld [vmem:[%s2200_s2 + $0x4] sm:$0xf] }
   0xe   :  { %330 = vmatpush.bf16.msra.mxu1 %v1690_v38  ;;  %v1746_v56 = vor.u32 %v1415_v50, %v1262_v49  ;;  %v1208_v57 = vld [vmem:[%s2200_s2 + $0xc] sm:$0xf0]  ;;  %v1412_v59 = vld [vmem:[%s2200_s2 + $0x58] sm:$0xf0]  ;;  %v1760_v60 = vor.u32 %v1402_v54, %v1206_v53  ;;  %v1765_v61 = vld [vmem:[%s2201_s1] sm:$0xff] }
   0xf   :  { %v1250_v58 = vld [vmem:[%s2200_s2 + $0x50] sm:$0xf]  ;;  %v1768_v62 = vor.u32 %v1401_v55, %v1208_v57  ;;  %v1238_v0 = vld [vmem:[%s2200_s2 + $0x38] sm:$0xf]  ;;  %v1409_v1 = vld [vmem:[%s2200_s2 + $0x40] sm:$0xf0]  ;;  %v82_v2 = vpack.c.bf16 %v1765_v61, %v1765_v61 }
  0x10   :  { %214 = vmatpush.bf16.msra.mxu2 %v1645_v23  ;;  %v1770_v63 = vor.u32 %v1412_v59, %v1250_v58  ;;  %v1785_v4 = vor.u32 %v1409_v1, %v1238_v0  ;;  %v1226_v5 = vld [vmem:[%s2200_s2 + $0x20] sm:$0xf]  ;;  %v1406_v6 = vld [vmem:[%s2200_s2 + $0x28] sm:$0xf0]  ;;  %v1214_v9 = vld [vmem:[%s2200_s2 + $0x8] sm:$0xf] }
  0x11   :  { %227 = vmatpush.bf16.msra.mxu3 %v1651_v25  ;;  %319 = vmatpush.bf16.msra.mxu0 %v1651_v25  ;;  %v1798_v8 = vor.u32 %v1406_v6, %v1226_v5  ;;  %v1403_v12 = vld [vmem:[%s2200_s2 + $0x10] sm:$0xf0]  ;;  %v79_v14 = vld [vmem:[%s2203_s0] sm:$0xff]  ;;  %v80_v15 = vld [vmem:[%s2203_s0 + $0x8] sm:$0xff] }
  0x12   :  { %331 = vmatpush.bf16.msra.mxu1 %v1718_v47  ;;  %v1810_v13 = vor.u32 %v1403_v12, %v1214_v9  ;;  %v1871_v46 = vld [vmem:[%s2202_s3] ss:$0 sm:$0xff]  ;;  %v81_v58 = vld [vmem:[%s2203_s0 + $0x10] sm:$0xff] }
  0x14   :  { %215 = vmatpush.bf16.msra.mxu2 %v1676_v33 }
  0x15   :  { %228 = vmatpush.bf16.msra.mxu3 %v1679_v34  ;;  %320 = vmatpush.bf16.msra.mxu0 %v1679_v34 }
  0x16   :  { %332 = vmatpush.bf16.msra.mxu1 %v1746_v56 }
  0x18   :  { %216 = vmatpush.bf16.msra.mxu2 %v1704_v42 }
  0x19   :  { %229 = vmatpush.bf16.msra.mxu3 %v1707_v43  ;;  %321 = vmatpush.bf16.msra.mxu0 %v1707_v43 }
  0x1a   :  { %333 = vmatpush.bf16.msra.mxu1 %v1770_v63 }
  0x1c   :  { %217 = vmatpush.bf16.msra.mxu2 %v1732_v51 }
  0x1d   :  { %230 = vmatpush.bf16.msra.mxu3 %v1735_v52  ;;  %322 = vmatpush.bf16.msra.mxu0 %v1735_v52 }
  0x1e   :  { %334 = vmatpush.bf16.msra.mxu1 %v1785_v4 }
  0x20   :  { %218 = vmatpush.bf16.msra.mxu2 %v1760_v60 }
  0x21   :  { %231 = vmatpush.bf16.msra.mxu3 %v1768_v62  ;;  %323 = vmatpush.bf16.msra.mxu0 %v1768_v62 }
  0x22   :  { %335 = vmatpush.bf16.msra.mxu1 %v1798_v8 }
  0x23   :  { %219 = vmatmul.bf16.vlgmr.msra.gmra.mxu2 %v82_v2 }
  0x24   :  { %237 = vmatpush.bf16.msrb.mxu2 %v1662_v29  ;;  %232 = vmatmul.bf16.vlgmr.msra.gmra.mxu3 %v82_v2 }
  0x25   :  { %303 = vmatpush.bf16.msrb.mxu3 %v1584_v3  ;;  %422 = vmatpush.bf16.msrb.mxu0 %v1662_v29 }
  0x26   :  { %336 = vmatpush.bf16.msra.mxu1 %v1810_v13 }
  0x28   :  { %238 = vmatpush.bf16.msrb.mxu2 %v1690_v38 }
  0x29   :  { %304 = vmatpush.bf16.msrb.mxu3 %v1604_v10  ;;  %423 = vmatpush.bf16.msrb.mxu0 %v1690_v38 }
  0x2a   :  { %489 = vmatpush.bf16.msrb.mxu1 %v1584_v3 }
  0x2c   :  { %239 = vmatpush.bf16.msrb.mxu2 %v1718_v47 }
  0x2d   :  { %305 = vmatpush.bf16.msrb.mxu3 %v1623_v16  ;;  %424 = vmatpush.bf16.msrb.mxu0 %v1718_v47 }
  0x2e   :  { %490 = vmatpush.bf16.msrb.mxu1 %v1604_v10 }
  0x30   :  { %240 = vmatpush.bf16.msrb.mxu2 %v1746_v56 }
  0x31   :  { %306 = vmatpush.bf16.msrb.mxu3 %v1645_v23  ;;  %425 = vmatpush.bf16.msrb.mxu0 %v1746_v56 }
  0x32   :  { %491 = vmatpush.bf16.msrb.mxu1 %v1623_v16 }
  0x34   :  { %241 = vmatpush.bf16.msrb.mxu2 %v1770_v63 }
  0x35   :  { %307 = vmatpush.bf16.msrb.mxu3 %v1676_v33  ;;  %426 = vmatpush.bf16.msrb.mxu0 %v1770_v63 }
  0x36   :  { %492 = vmatpush.bf16.msrb.mxu1 %v1645_v23 }
  0x38   :  { %242 = vmatpush.bf16.msrb.mxu2 %v1785_v4 }
  0x39   :  { %308 = vmatpush.bf16.msrb.mxu3 %v1704_v42  ;;  %427 = vmatpush.bf16.msrb.mxu0 %v1785_v4 }
  0x3a   :  { %493 = vmatpush.bf16.msrb.mxu1 %v1676_v33 }
  0x3c   :  { %243 = vmatpush.bf16.msrb.mxu2 %v1798_v8 }
  0x3d   :  { %309 = vmatpush.bf16.msrb.mxu3 %v1732_v51  ;;  %428 = vmatpush.bf16.msrb.mxu0 %v1798_v8 }
  0x3e   :  { %494 = vmatpush.bf16.msrb.mxu1 %v1704_v42 }
  0x40   :  { %244 = vmatpush.bf16.msrb.mxu2 %v1810_v13 }
  0x41   :  { %310 = vmatpush.bf16.msrb.mxu3 %v1760_v60  ;;  %429 = vmatpush.bf16.msrb.mxu0 %v1810_v13 }
  0x42   :  { %495 = vmatpush.bf16.msrb.mxu1 %v1732_v51 }
  0x43   :  { %245 = vmatmul.bf16.vlgmr.msrb.gmra.mxu2 %v82_v2 }
  0x44   :  { %396 = vmatpush.bf16.msra.mxu2 %v1584_v3 }
  0x45   :  { %409 = vmatpush.bf16.msra.mxu3 %v1595_v7 }
  0x46   :  { %496 = vmatpush.bf16.msrb.mxu1 %v1760_v60 }
  0x48   :  { %397 = vmatpush.bf16.msra.mxu2 %v1604_v10 }
  0x49   :  { %410 = vmatpush.bf16.msra.mxu3 %v1607_v11 }
  0x4c   :  { %398 = vmatpush.bf16.msra.mxu2 %v1623_v16 }
  0x4d   :  { %411 = vmatpush.bf16.msra.mxu3 %v1626_v17 }
  0x50   :  { %399 = vmatpush.bf16.msra.mxu2 %v1645_v23 }
  0x51   :  { %412 = vmatpush.bf16.msra.mxu3 %v1651_v25 }
  0x54   :  { %400 = vmatpush.bf16.msra.mxu2 %v1676_v33 }
  0x55   :  { %413 = vmatpush.bf16.msra.mxu3 %v1679_v34 }
  0x58   :  { %401 = vmatpush.bf16.msra.mxu2 %v1704_v42 }
  0x59   :  { %414 = vmatpush.bf16.msra.mxu3 %v1707_v43 }
  0x5c   :  { %402 = vmatpush.bf16.msra.mxu2 %v1732_v51 }
  0x5d   :  { %415 = vmatpush.bf16.msra.mxu3 %v1735_v52 }
  0x60   :  { %403 = vmatpush.bf16.msra.mxu2 %v1760_v60 }
  0x61   :  { %416 = vmatpush.bf16.msra.mxu3 %v1768_v62 }
  0x64   :  { %502 = vmatpush.bf16.msrb.mxu2 %v1595_v7 }
  0x68   :  { %503 = vmatpush.bf16.msrb.mxu2 %v1607_v11 }
  0x6c   :  { %504 = vmatpush.bf16.msrb.mxu2 %v1626_v17 }
  0x70   :  { %505 = vmatpush.bf16.msrb.mxu2 %v1651_v25 }
  0x74   :  { %506 = vmatpush.bf16.msrb.mxu2 %v1679_v34 }
  0x78   :  { %507 = vmatpush.bf16.msrb.mxu2 %v1707_v43 }
  0x7c   :  { %508 = vmatpush.bf16.msrb.mxu2 %v1735_v52 }
  0x80   :  { %509 = vmatpush.bf16.msrb.mxu2 %v1768_v62 }
  0xa6   :  { %v220_v18 = vpop.f32.mrf.mxu2 }
  0xa7   :  { %v250_v19 = vadd.f32 %v220_v18, %v79_v14  ;;  %v233_v20 = vpop.f32.mrf.mxu3 }
  0xa8   :  { %v270_v21 = vadd.f32 %v233_v20, %v80_v15 }
  0xa9   :  { %v1300_v22 = vmul.f32 -1.442695, %v250_v19 }
  0xaa   :  { %v1301_v24 = vmul.f32 -1.442695, %v270_v21 }
  0xab   :  { %1444 = vpow2.f32 %v1300_v22 }
  0xac   :  { %1446 = vpow2.f32 %v1301_v24 }
  0xae   :  { %v222_v26 = vpop.f32.mrf.mxu2 }
  0xaf   :  { %v235_v27 = vpop.f32.mrf.mxu3 }
  0xb1   :  { %v1445_v28 = vpop.eup %1444 }
  0xb2   :  { %v1447_v30 = vpop.eup %1446  ;;  %v254_v31 = vadd.f32 1.0, %v1445_v28 }
  0xb3   :  { %v274_v32 = vadd.f32 1.0, %v1447_v30  ;;  %v1302_v30 = vld [vmem:[%s2203_s0 + $0x18] sm:$0xff] }
  0xb4   :  { %1448 = vrcp.f32 %v254_v31  ;;  %v266_v40 = vand.u32 2147483648, %v254_v31  ;;  %v264_v45 = vand.u32 2147483647, %v254_v31  ;;  %vm260_vm1 = vweird.f32 %v254_v31 }
  0xb5   :  { %1450 = vrcp.f32 %v274_v32  ;;  %vm280_vm4 = vweird.f32 %v274_v32  ;;  %v286_v2 = vand.u32 2147483648, %v274_v32  ;;  %v284_v9 = vand.u32 2147483647, %v274_v32 }
  0xb6   :  { %v267_v49 = vor.u32 1.1754944e-38, %v266_v40  ;;  %vm265_vm3 = vcmp.eq.f32.partialorder %v264_v45, 8.507059e+37 }
  0xb7   :  { %v287_v12 = vor.u32 1.1754944e-38, %v286_v2  ;;  %vm285_vm7 = vcmp.eq.f32.partialorder %v284_v9, 8.507059e+37  ;;  %v1304_v9 = vld [vmem:[%s2203_s0 + $0x28] sm:$0xff] }
  0xba   :  { %v1449_v35 = vpop.eup %1448 }
  0xbb   :  { %v256_v36 = vmul.f32 %v1449_v35, %v254_v31  ;;  %v1451_v37 = vpop.eup %1450  ;;  %vm261_vm0 = vweird.f32 %v1449_v35 }
  0xbc   :  { %v276_v41 = vmul.f32 %v1451_v37, %v274_v32  ;;  %vm262_vm2 = vmor %vm260_vm1, %vm261_vm0  ;;  %vm281_vm5 = vweird.f32 %v1451_v37 }
  0xbd   :  { %v257_v39 = vsub.f32 1.0, %v256_v36  ;;  %vm282_vm6 = vmor %vm280_vm4, %vm281_vm5 }
  0xbe   :  { %v277_v50 = vsub.f32 1.0, %v276_v41 }
  0xbf   :  { %v258_v44 = vmul.f32 %v1449_v35, %v257_v39 }
  0xc0   :  { %v278_v0 = vmul.f32 %v1451_v37, %v277_v50 }
  0xc1   :  { %v259_v48 = vadd.f32 %v1449_v35, %v258_v44 }
  0xc2   :  { %v279_v6 = vadd.f32 %v1451_v37, %v278_v0 }
  0xc3   :  { %v263_v54 = vsel %vm262_vm2, %v1449_v35, %v259_v48 }
  0xc4   :  { %v268_v55 = vsel %vm265_vm3, %v267_v49, %v263_v54  ;;  %v283_v14 = vsel %vm282_vm6, %v1451_v37, %v279_v6 }
  0xc5   :  { %v288_v19 = vsel %vm285_vm7, %v287_v12, %v283_v14 }
  0xc6   :  { %v246_v53 = vpop.f32.mrf.mxu2 }
  0xc7   :  { %v290_v57 = vadd.f32 %v1871_v46, %v246_v53 }
  0xc9   :  { %v291_v59 = vmul.f32 %v290_v57, %v268_v55 }
  0xcb   :  { %v292_v1 = vadd.f32 %v291_v59, %v81_v58 }
  0xcd   :  { %1452 = vtanh.f32 %v292_v1 }
  0xce   :  { %v248_v5 = vpop.f32.mrf.mxu2 }
  0xd3   :  { %v1453_v15 = vpop.eup %1452 }
  0xd4   :  { %v294_v18 = vsub.f32 %v1765_v61, %v1453_v15  ;;  %v1303_v61 = vld [vmem:[%s2203_s0 + $0x20] sm:$0xff] }
  0xd6   :  { %v295_v20 = vmul.f32 %v294_v18, %v288_v19 }
  0xd8   :  { %v1878_v21 = vadd.f32 %v1453_v15, %v295_v20 }
  0xda   :  { %v302_v22 = vpack.c.bf16 %v1878_v21, %v1878_v21 }
  0xdc   :  { %311 = vmatmul.bf16.vlgmr.msrb.gmra.mxu3 %v302_v22  ;;  %324 = vmatmul.bf16.vlgmr.msra.gmra.mxu0 %v302_v22 }
  0xdd   :  { %337 = vmatmul.bf16.vlgmr.msra.gmra.mxu1 %v302_v22  ;;  %515 = vmatpush.bf16.msrb.mxu3 %v1662_v29 }
  0xde   :  { %582 = vmatpush.bf16.msra.mxu0 %v1584_v3  ;;  %595 = vmatpush.bf16.msra.mxu1 %v1595_v7 }
  0xe1   :  { %516 = vmatpush.bf16.msrb.mxu3 %v1690_v38 }
  0xe2   :  { %583 = vmatpush.bf16.msra.mxu0 %v1604_v10  ;;  %596 = vmatpush.bf16.msra.mxu1 %v1607_v11 }
  0xe5   :  { %517 = vmatpush.bf16.msrb.mxu3 %v1718_v47 }
  0xe6   :  { %584 = vmatpush.bf16.msra.mxu0 %v1623_v16  ;;  %597 = vmatpush.bf16.msra.mxu1 %v1626_v17 }
  0xe9   :  { %518 = vmatpush.bf16.msrb.mxu3 %v1746_v56 }
  0xea   :  { %585 = vmatpush.bf16.msra.mxu0 %v1645_v23  ;;  %598 = vmatpush.bf16.msra.mxu1 %v1651_v25 }
  0xed   :  { %519 = vmatpush.bf16.msrb.mxu3 %v1770_v63 }
  0xee   :  { %586 = vmatpush.bf16.msra.mxu0 %v1676_v33  ;;  %599 = vmatpush.bf16.msra.mxu1 %v1679_v34 }
  0xf1   :  { %520 = vmatpush.bf16.msrb.mxu3 %v1785_v4 }
  0xf2   :  { %587 = vmatpush.bf16.msra.mxu0 %v1704_v42  ;;  %600 = vmatpush.bf16.msra.mxu1 %v1707_v43 }
  0xf5   :  { %521 = vmatpush.bf16.msrb.mxu3 %v1798_v8 }
  0xf6   :  { %588 = vmatpush.bf16.msra.mxu0 %v1732_v51  ;;  %601 = vmatpush.bf16.msra.mxu1 %v1735_v52 }
  0xf9   :  { %522 = vmatpush.bf16.msrb.mxu3 %v1810_v13 }
  0xfa   :  { %589 = vmatpush.bf16.msra.mxu0 %v1760_v60  ;;  %602 = vmatpush.bf16.msra.mxu1 %v1768_v62 }
 0x159   :  { %v325_v24 = vpop.f32.mrf.mxu0 }
 0x15a   :  { %v362_v26 = vadd.f32 %v1303_v61, %v325_v24  ;;  %v338_v27 = vpop.f32.mrf.mxu1 }
 0x15b   :  { %v382_v2 = vadd.f32 %v1871_v46, %v338_v27 }
 0x15c   :  { %v1306_v28 = vmul.f32 -1.442695, %v362_v26 }
 0x15e   :  { %1454 = vpow2.f32 %v1306_v28 }
 0x15f   :  { %v312_v31 = vpop.f32.mrf.mxu3 }
 0x160   :  { %v342_v32 = vadd.f32 %v1302_v30, %v312_v31 }
 0x161   :  { %v327_v35 = vpop.f32.mrf.mxu0 }
 0x162   :  { %v1305_v36 = vmul.f32 -1.442695, %v342_v32  ;;  %v340_v37 = vpop.f32.mrf.mxu1  ;;  %v1307_v35 = vld [vmem:[%s2203_s0 + $0x30] sm:$0xff] }
 0x164   :  { %1456 = vpow2.f32 %v1305_v36  ;;  %v1455_v39 = vpop.eup %1454  ;;  %v1308_v36 = vld [vmem:[%s2203_s0 + $0x38] sm:$0xff] }
 0x165   :  { %v366_v44 = vadd.f32 1.0, %v1455_v39 }
 0x167   :  { %v314_v40 = vpop.f32.mrf.mxu3  ;;  %v378_v19 = vand.u32 2147483648, %v366_v44  ;;  %vm372_vm13 = vweird.f32 %v366_v44  ;;  %v376_v20 = vand.u32 2147483647, %v366_v44 }
 0x169   :  { %v379_v24 = vor.u32 1.1754944e-38, %v378_v19  ;;  %vm377_vm15 = vcmp.eq.f32.partialorder %v376_v20, 8.507059e+37 }
 0x16a   :  { %v1457_v41 = vpop.eup %1456 }
 0x16b   :  { %v346_v45 = vadd.f32 1.0, %v1457_v41 }
 0x16d   :  { %1458 = vrcp.f32 %v346_v45  ;;  %v358_v55 = vand.u32 2147483648, %v346_v45  ;;  %v356_v58 = vand.u32 2147483647, %v346_v45  ;;  %vm352_vm9 = vweird.f32 %v346_v45 }
 0x16e   :  { %1460 = vrcp.f32 %v366_v44 }
 0x16f   :  { %v359_v1 = vor.u32 1.1754944e-38, %v358_v55  ;;  %vm357_vm11 = vcmp.eq.f32.partialorder %v356_v58, 8.507059e+37 }
 0x173   :  { %v1459_v48 = vpop.eup %1458 }
 0x174   :  { %v1461_v49 = vpop.eup %1460  ;;  %v348_v50 = vmul.f32 %v1459_v48, %v346_v45  ;;  %vm353_vm8 = vweird.f32 %v1459_v48 }
 0x175   :  { %v368_v54 = vmul.f32 %v1461_v49, %v366_v44  ;;  %vm354_vm10 = vmor %vm352_vm9, %vm353_vm8  ;;  %vm373_vm12 = vweird.f32 %v1461_v49 }
 0x176   :  { %v349_v53 = vsub.f32 1.0, %v348_v50  ;;  %vm374_vm14 = vmor %vm372_vm13, %vm373_vm12 }
 0x177   :  { %v369_v0 = vsub.f32 1.0, %v368_v54 }
 0x178   :  { %v350_v57 = vmul.f32 %v1459_v48, %v349_v53 }
 0x179   :  { %v370_v14 = vmul.f32 %v1461_v49, %v369_v0 }
 0x17a   :  { %v351_v59 = vadd.f32 %v1459_v48, %v350_v57 }
 0x17b   :  { %v371_v18 = vadd.f32 %v1461_v49, %v370_v14 }
 0x17c   :  { %v355_v5 = vsel %vm354_vm10, %v1459_v48, %v351_v59 }
 0x17d   :  { %v360_v6 = vsel %vm357_vm11, %v359_v1, %v355_v5  ;;  %v375_v22 = vsel %vm374_vm14, %v1461_v49, %v371_v18 }
 0x17e   :  { %v383_v12 = vmul.f32 %v382_v2, %v360_v6  ;;  %v380_v27 = vsel %vm377_vm15, %v379_v24, %v375_v22  ;;  %v1309_v22 = vld [vmem:[%s2203_s0 + $0x40] sm:$0xff] }
 0x180   :  { %v384_v15 = vadd.f32 %v1304_v9, %v383_v12 }
 0x182   :  { %1462 = vtanh.f32 %v384_v15 }
 0x188   :  { %v1463_v61 = vpop.eup %1462 }
 0x189   :  { %v386_v26 = vsub.f32 %v1878_v21, %v1463_v61 }
 0x18b   :  { %v387_v28 = vmul.f32 %v386_v26, %v380_v27 }
 0x18d   :  { %v1917_v30 = vadd.f32 %v1463_v61, %v387_v28 }
 0x18f   :  { %v395_v31 = vpack.c.bf16 %v1917_v30, %v1917_v30 }
 0x191   :  { %404 = vmatmul.bf16.vlgmr.msra.gmra.mxu2 %v395_v31  ;;  %417 = vmatmul.bf16.vlgmr.msra.gmra.mxu3 %v395_v31 }
 0x192   :  { %430 = vmatmul.bf16.vlgmr.msrb.gmra.mxu0 %v395_v31  ;;  %608 = vmatpush.bf16.msra.mxu2 %v1662_v29 }
 0x193   :  { %675 = vmatpush.bf16.msra.mxu3 %v1584_v3  ;;  %688 = vmatpush.bf16.msrb.mxu0 %v1595_v7 }
 0x196   :  { %609 = vmatpush.bf16.msra.mxu2 %v1690_v38 }
 0x197   :  { %676 = vmatpush.bf16.msra.mxu3 %v1604_v10  ;;  %689 = vmatpush.bf16.msrb.mxu0 %v1607_v11 }
 0x19a   :  { %610 = vmatpush.bf16.msra.mxu2 %v1718_v47 }
 0x19b   :  { %677 = vmatpush.bf16.msra.mxu3 %v1623_v16  ;;  %690 = vmatpush.bf16.msrb.mxu0 %v1626_v17 }
 0x19e   :  { %611 = vmatpush.bf16.msra.mxu2 %v1746_v56 }
 0x19f   :  { %678 = vmatpush.bf16.msra.mxu3 %v1645_v23  ;;  %691 = vmatpush.bf16.msrb.mxu0 %v1651_v25 }
 0x1a2   :  { %612 = vmatpush.bf16.msra.mxu2 %v1770_v63 }
 0x1a3   :  { %679 = vmatpush.bf16.msra.mxu3 %v1676_v33  ;;  %692 = vmatpush.bf16.msrb.mxu0 %v1679_v34 }
 0x1a6   :  { %613 = vmatpush.bf16.msra.mxu2 %v1785_v4 }
 0x1a7   :  { %680 = vmatpush.bf16.msra.mxu3 %v1704_v42  ;;  %693 = vmatpush.bf16.msrb.mxu0 %v1707_v43 }
 0x1aa   :  { %614 = vmatpush.bf16.msra.mxu2 %v1798_v8 }
 0x1ab   :  { %681 = vmatpush.bf16.msra.mxu3 %v1732_v51  ;;  %694 = vmatpush.bf16.msrb.mxu0 %v1735_v52 }
 0x1ae   :  { %615 = vmatpush.bf16.msra.mxu2 %v1810_v13 }
 0x1af   :  { %682 = vmatpush.bf16.msra.mxu3 %v1760_v60  ;;  %695 = vmatpush.bf16.msrb.mxu0 %v1768_v62 }
 0x20f   :  { %v431_v32 = vpop.f32.mrf.mxu0 }
 0x210   :  { %v475_v18 = vadd.f32 %v1871_v46, %v431_v32 }
 0x214   :  { %v405_v37 = vpop.f32.mrf.mxu2  ;;  %v418_v39 = vpop.f32.mrf.mxu3 }
 0x215   :  { %v435_v40 = vadd.f32 %v1307_v35, %v405_v37  ;;  %v455_v41 = vadd.f32 %v1308_v36, %v418_v39 }
 0x217   :  { %v1310_v44 = vmul.f32 -1.442695, %v435_v40  ;;  %v1311_v45 = vmul.f32 -1.442695, %v455_v41  ;;  %v433_v48 = vpop.f32.mrf.mxu0 }
 0x219   :  { %1464 = vpow2.f32 %v1310_v44 }
 0x21a   :  { %1466 = vpow2.f32 %v1311_v45  ;;  %v1312_v45 = vld [vmem:[%s2203_s0 + $0x48] sm:$0xff] }
 0x21c   :  { %v407_v49 = vpop.f32.mrf.mxu2  ;;  %v420_v50 = vpop.f32.mrf.mxu3 }
 0x21f   :  { %v1465_v53 = vpop.eup %1464 }
 0x220   :  { %v1467_v54 = vpop.eup %1466  ;;  %v439_v55 = vadd.f32 1.0, %v1465_v53  ;;  %v1313_v53 = vld [vmem:[%s2203_s0 + $0x50] sm:$0xff] }
 0x221   :  { %v459_v57 = vadd.f32 1.0, %v1467_v54 }
 0x222   :  { %1468 = vrcp.f32 %v439_v55  ;;  %v451_v2 = vand.u32 2147483648, %v439_v55  ;;  %v449_v9 = vand.u32 2147483647, %v439_v55  ;;  %vm445_vm1 = vweird.f32 %v439_v55 }
 0x223   :  { %1470 = vrcp.f32 %v459_v57  ;;  %v471_v28 = vand.u32 2147483648, %v459_v57  ;;  %vm465_vm5 = vweird.f32 %v459_v57  ;;  %v469_v31 = vand.u32 2147483647, %v459_v57 }
 0x224   :  { %v452_v14 = vor.u32 1.1754944e-38, %v451_v2  ;;  %vm450_vm3 = vcmp.eq.f32.partialorder %v449_v9, 8.507059e+37 }
 0x225   :  { %v472_v32 = vor.u32 1.1754944e-38, %v471_v28  ;;  %vm470_vm7 = vcmp.eq.f32.partialorder %v469_v31, 8.507059e+37 }
 0x228   :  { %v1469_v58 = vpop.eup %1468 }
 0x229   :  { %v1471_v59 = vpop.eup %1470  ;;  %v441_v0 = vmul.f32 %v1469_v58, %v439_v55  ;;  %vm446_vm0 = vweird.f32 %v1469_v58 }
 0x22a   :  { %v461_v5 = vmul.f32 %v1471_v59, %v459_v57  ;;  %vm447_vm2 = vmor %vm445_vm1, %vm446_vm0  ;;  %vm466_vm4 = vweird.f32 %v1471_v59 }
 0x22b   :  { %v442_v1 = vsub.f32 1.0, %v441_v0  ;;  %vm467_vm6 = vmor %vm465_vm5, %vm466_vm4 }
 0x22c   :  { %v462_v15 = vsub.f32 1.0, %v461_v5 }
 0x22d   :  { %v443_v6 = vmul.f32 %v1469_v58, %v442_v1 }
 0x22e   :  { %v463_v24 = vmul.f32 %v1471_v59, %v462_v15 }
 0x22f   :  { %v444_v12 = vadd.f32 %v1469_v58, %v443_v6 }
 0x230   :  { %v464_v27 = vadd.f32 %v1471_v59, %v463_v24 }
 0x231   :  { %v448_v19 = vsel %vm447_vm2, %v1469_v58, %v444_v12 }
 0x232   :  { %v453_v20 = vsel %vm450_vm3, %v452_v14, %v448_v19  ;;  %v468_v35 = vsel %vm467_vm6, %v1471_v59, %v464_v27 }
 0x233   :  { %v476_v61 = vmul.f32 %v475_v18, %v453_v20  ;;  %v473_v39 = vsel %vm470_vm7, %v472_v32, %v468_v35  ;;  %v1314_v35 = vld [vmem:[%s2203_s0 + $0x58] sm:$0xff] }
 0x235   :  { %v477_v26 = vadd.f32 %v1309_v22, %v476_v61 }
 0x237   :  { %1472 = vtanh.f32 %v477_v26 }
 0x23d   :  { %v1473_v36 = vpop.eup %1472 }
 0x23e   :  { %v479_v37 = vsub.f32 %v1917_v30, %v1473_v36 }
 0x240   :  { %v480_v40 = vmul.f32 %v479_v37, %v473_v39 }
 0x242   :  { %v1956_v41 = vadd.f32 %v1473_v36, %v480_v40 }
 0x244   :  { %v488_v44 = vpack.c.bf16 %v1956_v41, %v1956_v41 }
 0x246   :  { %497 = vmatmul.bf16.vlgmr.msrb.gmra.mxu1 %v488_v44  ;;  %510 = vmatmul.bf16.vlgmr.msrb.gmra.mxu2 %v488_v44 }
 0x247   :  { %523 = vmatmul.bf16.vlgmr.msrb.gmra.mxu3 %v488_v44  ;;  %701 = vmatpush.bf16.msrb.mxu1 %v1662_v29 }
 0x248   :  { %768 = vmatpush.bf16.msrb.mxu2 %v1584_v3  ;;  %781 = vmatpush.bf16.msrb.mxu3 %v1595_v7 }
 0x24b   :  { %702 = vmatpush.bf16.msrb.mxu1 %v1690_v38 }
 0x24c   :  { %769 = vmatpush.bf16.msrb.mxu2 %v1604_v10  ;;  %782 = vmatpush.bf16.msrb.mxu3 %v1607_v11 }
 0x24f   :  { %703 = vmatpush.bf16.msrb.mxu1 %v1718_v47 }
 0x250   :  { %770 = vmatpush.bf16.msrb.mxu2 %v1623_v16  ;;  %783 = vmatpush.bf16.msrb.mxu3 %v1626_v17 }
 0x253   :  { %704 = vmatpush.bf16.msrb.mxu1 %v1746_v56 }
 0x254   :  { %771 = vmatpush.bf16.msrb.mxu2 %v1645_v23  ;;  %784 = vmatpush.bf16.msrb.mxu3 %v1651_v25 }
 0x257   :  { %705 = vmatpush.bf16.msrb.mxu1 %v1770_v63 }
 0x258   :  { %772 = vmatpush.bf16.msrb.mxu2 %v1676_v33  ;;  %785 = vmatpush.bf16.msrb.mxu3 %v1679_v34 }
 0x25b   :  { %706 = vmatpush.bf16.msrb.mxu1 %v1785_v4 }
 0x25c   :  { %773 = vmatpush.bf16.msrb.mxu2 %v1704_v42  ;;  %786 = vmatpush.bf16.msrb.mxu3 %v1707_v43 }
 0x25f   :  { %707 = vmatpush.bf16.msrb.mxu1 %v1798_v8 }
 0x260   :  { %774 = vmatpush.bf16.msrb.mxu2 %v1732_v51  ;;  %787 = vmatpush.bf16.msrb.mxu3 %v1735_v52 }
 0x263   :  { %708 = vmatpush.bf16.msrb.mxu1 %v1810_v13 }
 0x264   :  { %775 = vmatpush.bf16.msrb.mxu2 %v1760_v60  ;;  %788 = vmatpush.bf16.msrb.mxu3 %v1768_v62 }
 0x2c3   :  { %v498_v48 = vpop.f32.mrf.mxu1 }
 0x2c4   :  { %v528_v49 = vadd.f32 %v1312_v45, %v498_v48 }
 0x2c6   :  { %v1315_v50 = vmul.f32 -1.442695, %v528_v49 }
 0x2c8   :  { %1474 = vpow2.f32 %v1315_v50 }
 0x2c9   :  { %v511_v54 = vpop.f32.mrf.mxu2 }
 0x2ca   :  { %v548_v55 = vadd.f32 %v1313_v53, %v511_v54  ;;  %v524_v57 = vpop.f32.mrf.mxu3 }
 0x2cb   :  { %v500_v58 = vpop.f32.mrf.mxu1  ;;  %v568_v31 = vadd.f32 %v1871_v46, %v524_v57 }
 0x2cc   :  { %v1316_v59 = vmul.f32 -1.442695, %v548_v55 }
 0x2ce   :  { %v1475_v0 = vpop.eup %1474  ;;  %1476 = vpow2.f32 %v1316_v59 }
 0x2cf   :  { %v532_v1 = vadd.f32 1.0, %v1475_v0 }
 0x2d1   :  { %1478 = vrcp.f32 %v532_v1  ;;  %v513_v2 = vpop.f32.mrf.mxu2  ;;  %v544_v18 = vand.u32 2147483648, %v532_v1  ;;  %v542_v20 = vand.u32 2147483647, %v532_v1  ;;  %vm538_vm9 = vweird.f32 %v532_v1 }
 0x2d2   :  { %v526_v5 = vpop.f32.mrf.mxu3 }
 0x2d3   :  { %v545_v26 = vor.u32 1.1754944e-38, %v544_v18  ;;  %vm543_vm11 = vcmp.eq.f32.partialorder %v542_v20, 8.507059e+37 }
 0x2d4   :  { %v1477_v6 = vpop.eup %1476 }
 0x2d5   :  { %v552_v9 = vadd.f32 1.0, %v1477_v6 }
 0x2d7   :  { %v1479_v12 = vpop.eup %1478  ;;  %1480 = vrcp.f32 %v552_v9  ;;  %v564_v44 = vand.u32 2147483648, %v552_v9  ;;  %vm558_vm13 = vweird.f32 %v552_v9  ;;  %v562_v45 = vand.u32 2147483647, %v552_v9 }
 0x2d8   :  { %v534_v14 = vmul.f32 %v1479_v12, %v532_v1  ;;  %vm539_vm8 = vweird.f32 %v1479_v12 }
 0x2d9   :  { %vm540_vm10 = vmor %vm538_vm9, %vm539_vm8  ;;  %v565_v50 = vor.u32 1.1754944e-38, %v564_v44  ;;  %vm563_vm15 = vcmp.eq.f32.partialorder %v562_v45, 8.507059e+37 }
 0x2da   :  { %v535_v15 = vsub.f32 1.0, %v534_v14 }
 0x2dc   :  { %v536_v19 = vmul.f32 %v1479_v12, %v535_v15 }
 0x2dd   :  { %v1481_v22 = vpop.eup %1480 }
 0x2de   :  { %v554_v61 = vmul.f32 %v1481_v22, %v552_v9  ;;  %v537_v24 = vadd.f32 %v1479_v12, %v536_v19  ;;  %vm559_vm12 = vweird.f32 %v1481_v22 }
 0x2df   :  { %vm560_vm14 = vmor %vm558_vm13, %vm559_vm12 }
 0x2e0   :  { %v555_v27 = vsub.f32 1.0, %v554_v61  ;;  %v541_v28 = vsel %vm540_vm10, %v1479_v12, %v537_v24 }
 0x2e1   :  { %v546_v36 = vsel %vm543_vm11, %v545_v26, %v541_v28 }
 0x2e2   :  { %v569_v32 = vmul.f32 %v568_v31, %v546_v36  ;;  %v556_v37 = vmul.f32 %v1481_v22, %v555_v27 }
 0x2e4   :  { %v570_v39 = vadd.f32 %v1314_v35, %v569_v32  ;;  %v557_v40 = vadd.f32 %v1481_v22, %v556_v37 }
 0x2e6   :  { %1482 = vtanh.f32 %v570_v39  ;;  %v561_v48 = vsel %vm560_vm14, %v1481_v22, %v557_v40  ;;  %v1319_v22 = vld [vmem:[%s2203_s0 + $0x70] sm:$0xff] }
 0x2e7   :  { %v566_v54 = vsel %vm563_vm15, %v565_v50, %v561_v48 }
 0x2ec   :  { %v1483_v49 = vpop.eup %1482 }
 0x2ed   :  { %v572_v53 = vsub.f32 %v1956_v41, %v1483_v49 }
 0x2ef   :  { %v573_v55 = vmul.f32 %v572_v53, %v566_v54 }
 0x2f1   :  { %v1995_v57 = vadd.f32 %v1483_v49, %v573_v55  ;;  %v1323_v49 = vld [vmem:[%s2203_s0 + $0x80] sm:$0xff] }
 0x2f3   :  { %v581_v58 = vpack.c.bf16 %v1995_v57, %v1995_v57 }
 0x2f5   :  { %590 = vmatmul.bf16.vlgmr.msra.gmra.mxu0 %v581_v58  ;;  %603 = vmatmul.bf16.vlgmr.msra.gmra.mxu1 %v581_v58 }
 0x2f6   :  { %616 = vmatmul.bf16.vlgmr.msra.gmra.mxu2 %v581_v58  ;;  %794 = vmatpush.bf16.msra.mxu0 %v1662_v29  ;;  %v1430_v58 = vld [vmem:[%s2204_s4 + $0x28] sm:$0xff] }
 0x2f7   :  { %861 = vmatpush.bf16.msra.mxu1 %v1584_v3  ;;  %874 = vmatpush.bf16.msra.mxu2 %v1595_v7  ;;  %v1317_v3 = vld [vmem:[%s2203_s0 + $0x60] sm:$0xff]  ;;  %v1318_v7 = vld [vmem:[%s2203_s0 + $0x68] sm:$0xff] }
 0x2fa   :  { %795 = vmatpush.bf16.msra.mxu0 %v1690_v38 }
 0x2fb   :  { %862 = vmatpush.bf16.msra.mxu1 %v1604_v10  ;;  %875 = vmatpush.bf16.msra.mxu2 %v1607_v11 }
 0x2fe   :  { %796 = vmatpush.bf16.msra.mxu0 %v1718_v47 }
 0x2ff   :  { %863 = vmatpush.bf16.msra.mxu1 %v1623_v16  ;;  %876 = vmatpush.bf16.msra.mxu2 %v1626_v17 }
 0x302   :  { %797 = vmatpush.bf16.msra.mxu0 %v1746_v56 }
 0x303   :  { %864 = vmatpush.bf16.msra.mxu1 %v1645_v23  ;;  %877 = vmatpush.bf16.msra.mxu2 %v1651_v25 }
 0x306   :  { %798 = vmatpush.bf16.msra.mxu0 %v1770_v63 }
 0x307   :  { %865 = vmatpush.bf16.msra.mxu1 %v1676_v33  ;;  %878 = vmatpush.bf16.msra.mxu2 %v1679_v34 }
 0x30a   :  { %799 = vmatpush.bf16.msra.mxu0 %v1785_v4 }
 0x30b   :  { %866 = vmatpush.bf16.msra.mxu1 %v1704_v42  ;;  %879 = vmatpush.bf16.msra.mxu2 %v1707_v43 }
 0x30e   :  { %800 = vmatpush.bf16.msra.mxu0 %v1798_v8 }
 0x30f   :  { %867 = vmatpush.bf16.msra.mxu1 %v1732_v51  ;;  %880 = vmatpush.bf16.msra.mxu2 %v1735_v52 }
 0x312   :  { %801 = vmatpush.bf16.msra.mxu0 %v1810_v13 }
 0x313   :  { %868 = vmatpush.bf16.msra.mxu1 %v1760_v60  ;;  %881 = vmatpush.bf16.msra.mxu2 %v1768_v62 }
 0x372   :  { %v591_v10 = vpop.f32.mrf.mxu0  ;;  %v604_v11 = vpop.f32.mrf.mxu1 }
 0x373   :  { %v621_v16 = vadd.f32 %v1317_v3, %v591_v10  ;;  %v641_v17 = vadd.f32 %v1318_v7, %v604_v11  ;;  %v1429_v10 = vld [vmem:[%s2204_s4 + $0x20] sm:$0xff] }
 0x375   :  { %v1320_v23 = vmul.f32 -1.442695, %v621_v16  ;;  %v1321_v25 = vmul.f32 -1.442695, %v641_v17 }
 0x377   :  { %1484 = vpow2.f32 %v1320_v23  ;;  %v1428_v23 = vld [vmem:[%s2204_s4 + $0x18] sm:$0xff] }
 0x378   :  { %1486 = vpow2.f32 %v1321_v25 }
 0x379   :  { %v617_v33 = vpop.f32.mrf.mxu2 }
 0x37a   :  { %v593_v34 = vpop.f32.mrf.mxu0  ;;  %v606_v42 = vpop.f32.mrf.mxu1  ;;  %v661_v20 = vadd.f32 %v1871_v46, %v617_v33  ;;  %v1427_v33 = vld [vmem:[%s2204_s4 + $0x10] sm:$0xff] }
 0x37d   :  { %v1485_v43 = vpop.eup %1484 }
 0x37e   :  { %v1487_v51 = vpop.eup %1486  ;;  %v625_v52 = vadd.f32 1.0, %v1485_v43 }
 0x37f   :  { %v645_v60 = vadd.f32 1.0, %v1487_v51 }
 0x380   :  { %1488 = vrcp.f32 %v625_v52  ;;  %v637_v6 = vand.u32 2147483648, %v625_v52  ;;  %v635_v12 = vand.u32 2147483647, %v625_v52  ;;  %vm631_vm1 = vweird.f32 %v625_v52 }
 0x381   :  { %1490 = vrcp.f32 %v645_v60  ;;  %v619_v62 = vpop.f32.mrf.mxu2  ;;  %v657_v31 = vand.u32 2147483648, %v645_v60  ;;  %vm651_vm5 = vweird.f32 %v645_v60  ;;  %v655_v35 = vand.u32 2147483647, %v645_v60 }
 0x382   :  { %v638_v18 = vor.u32 1.1754944e-38, %v637_v6  ;;  %vm636_vm3 = vcmp.eq.f32.partialorder %v635_v12, 8.507059e+37 }
 0x383   :  { %v658_v37 = vor.u32 1.1754944e-38, %v657_v31  ;;  %vm656_vm7 = vcmp.eq.f32.partialorder %v655_v35, 8.507059e+37 }
 0x386   :  { %v1489_v59 = vpop.eup %1488 }
 0x387   :  { %v1491_v0 = vpop.eup %1490  ;;  %v627_v1 = vmul.f32 %v1489_v59, %v625_v52  ;;  %vm632_vm0 = vweird.f32 %v1489_v59 }
 0x388   :  { %v647_v5 = vmul.f32 %v1491_v0, %v645_v60  ;;  %vm633_vm2 = vmor %vm631_vm1, %vm632_vm0  ;;  %vm652_vm4 = vweird.f32 %v1491_v0  ;;  %v1426_v60 = vld [vmem:[%s2204_s4 + $0x8] sm:$0xff] }
 0x389   :  { %v628_v2 = vsub.f32 1.0, %v627_v1  ;;  %vm653_vm6 = vmor %vm651_vm5, %vm652_vm4 }
 0x38a   :  { %v648_v15 = vsub.f32 1.0, %v647_v5  ;;  %v1425_v5 = vld [vmem:[%s2204_s4] sm:$0xff] }
 0x38b   :  { %v629_v9 = vmul.f32 %v1489_v59, %v628_v2 }
 0x38c   :  { %v649_v26 = vmul.f32 %v1491_v0, %v648_v15 }
 0x38d   :  { %v630_v14 = vadd.f32 %v1489_v59, %v629_v9 }
 0x38e   :  { %v650_v28 = vadd.f32 %v1491_v0, %v649_v26 }
 0x38f   :  { %v634_v19 = vsel %vm633_vm2, %v1489_v59, %v630_v14  ;;  %v1324_v14 = vld [vmem:[%s2203_s0 + $0x88] sm:$0xff] }
 0x390   :  { %v639_v61 = vsel %vm636_vm3, %v638_v18, %v634_v19  ;;  %v654_v36 = vsel %vm653_vm6, %v1491_v0, %v650_v28 }
 0x391   :  { %v662_v24 = vmul.f32 %v661_v20, %v639_v61  ;;  %v659_v40 = vsel %vm656_vm7, %v658_v37, %v654_v36  ;;  %v963_v37 = vpack.c.bf16 %v1995_v57, %v1956_v41 }
 0x393   :  { %v663_v27 = vadd.f32 %v1319_v22, %v662_v24 }
 0x395   :  { %1492 = vtanh.f32 %v663_v27 }
 0x39b   :  { %v1493_v32 = vpop.eup %1492 }
 0x39c   :  { %v665_v39 = vsub.f32 %v1995_v57, %v1493_v32 }
 0x39e   :  { %v666_v44 = vmul.f32 %v665_v39, %v659_v40 }
 0x3a0   :  { %v2034_v45 = vadd.f32 %v1493_v32, %v666_v44  ;;  %v962_v32 = vpack.c.bf16 %v1917_v30, %v1878_v21  ;;  %v1327_v44 = vld [vmem:[%s2203_s0 + $0x90] sm:$0xff] }
 0x3a2   :  { %v674_v48 = vpack.c.bf16 %v2034_v45, %v2034_v45 }
 0x3a4   :  { %683 = vmatmul.bf16.vlgmr.msra.gmra.mxu3 %v674_v48  ;;  %696 = vmatmul.bf16.vlgmr.msrb.gmra.mxu0 %v674_v48 }
 0x3a5   :  { %709 = vmatmul.bf16.vlgmr.msrb.gmra.mxu1 %v674_v48  ;;  %887 = vmatpush.bf16.msra.mxu3 %v1662_v29  ;;  %v1328_v48 = vld [vmem:[%s2203_s0 + $0x98] sm:$0xff] }
 0x3a9   :  { %888 = vmatpush.bf16.msra.mxu3 %v1690_v38 }
 0x3ad   :  { %889 = vmatpush.bf16.msra.mxu3 %v1718_v47  ;;  %v1322_v47 = vld [vmem:[%s2203_s0 + $0x78] sm:$0xff] }
 0x3b1   :  { %890 = vmatpush.bf16.msra.mxu3 %v1746_v56  ;;  %v1432_v56 = vld [vmem:[%s2204_s4 + $0x38] sm:$0xff] }
 0x3b2   :  { %1034 = vmatpush.bf16.msrb.mxu0 %v1432_v56 }
 0x3b5   :  { %891 = vmatpush.bf16.msra.mxu3 %v1770_v63 }
 0x3b9   :  { %892 = vmatpush.bf16.msra.mxu3 %v1785_v4 }
 0x3bd   :  { %893 = vmatpush.bf16.msra.mxu3 %v1798_v8  ;;  %v1431_v8 = vld [vmem:[%s2204_s4 + $0x30] sm:$0xff] }
 0x3be   :  { %1035 = vmatpush.bf16.msrb.mxu0 %v1431_v8  ;;  %v1438_v8 = vld [vmem:[%s2206_s6 + $0x28] sm:$0xff] }
 0x3c1   :  { %894 = vmatpush.bf16.msra.mxu3 %v1810_v13 }
 0x3c2   :  { %1036 = vmatpush.bf16.msrb.mxu0 %v1430_v58  ;;  %v1436_v58 = vld [vmem:[%s2206_s6 + $0x18] sm:$0xff] }
 0x3c6   :  { %1037 = vmatpush.bf16.msrb.mxu0 %v1429_v10  ;;  %v1435_v10 = vld [vmem:[%s2206_s6 + $0x10] sm:$0xff] }
 0x3ca   :  { %1038 = vmatpush.bf16.msrb.mxu0 %v1428_v23 }
 0x3ce   :  { %1039 = vmatpush.bf16.msrb.mxu0 %v1427_v33  ;;  %v1434_v33 = vld [vmem:[%s2206_s6 + $0x8] sm:$0xff] }
 0x3d2   :  { %1040 = vmatpush.bf16.msrb.mxu0 %v1426_v60 }
 0x3d6   :  { %1041 = vmatpush.bf16.msrb.mxu0 %v1425_v5 }
 0x421   :  { %v697_v50 = vpop.f32.mrf.mxu0 }
 0x422   :  { %v734_v29 = vadd.f32 %v1323_v49, %v697_v50  ;;  %v710_v53 = vpop.f32.mrf.mxu1 }
 0x423   :  { %v754_v6 = vadd.f32 %v1871_v46, %v710_v53  ;;  %v1439_v53 = vld [vmem:[%s2206_s6 + $0x30] sm:$0xff] }
 0x424   :  { %v1326_v38 = vmul.f32 -1.442695, %v734_v29 }
 0x426   :  { %1494 = vpow2.f32 %v1326_v38 }
 0x427   :  { %v684_v63 = vpop.f32.mrf.mxu3 }
 0x428   :  { %v714_v4 = vadd.f32 %v1322_v47, %v684_v63 }
 0x429   :  { %v699_v13 = vpop.f32.mrf.mxu0 }
 0x42a   :  { %v1325_v54 = vmul.f32 -1.442695, %v714_v4  ;;  %v712_v55 = vpop.f32.mrf.mxu1 }
 0x42c   :  { %1496 = vpow2.f32 %v1325_v54  ;;  %v1495_v3 = vpop.eup %1494  ;;  %v1437_v54 = vld [vmem:[%s2206_s6 + $0x20] sm:$0xff] }
 0x42d   :  { %v738_v16 = vadd.f32 1.0, %v1495_v3 }
 0x42f   :  { %v686_v7 = vpop.f32.mrf.mxu3  ;;  %v750_v22 = vand.u32 2147483648, %v738_v16  ;;  %vm744_vm13 = vweird.f32 %v738_v16  ;;  %v748_v61 = vand.u32 2147483647, %v738_v16 }
 0x431   :  { %v751_v26 = vor.u32 1.1754944e-38, %v750_v22  ;;  %vm749_vm15 = vcmp.eq.f32.partialorder %v748_v61, 8.507059e+37 }
 0x432   :  { %v1497_v11 = vpop.eup %1496 }
 0x433   :  { %v718_v17 = vadd.f32 1.0, %v1497_v11 }
 0x435   :  { %1498 = vrcp.f32 %v718_v17  ;;  %v730_v52 = vand.u32 2147483648, %v718_v17  ;;  %v728_v59 = vand.u32 2147483647, %v718_v17  ;;  %vm724_vm9 = vweird.f32 %v718_v17 }
 0x436   :  { %1500 = vrcp.f32 %v738_v16 }
 0x437   :  { %v731_v2 = vor.u32 1.1754944e-38, %v730_v52  ;;  %vm729_vm11 = vcmp.eq.f32.partialorder %v728_v59, 8.507059e+37  ;;  %v1329_v59 = vld [vmem:[%s2203_s0 + $0xa0] sm:$0xff] }
 0x43b   :  { %v1499_v25 = vpop.eup %1498 }
 0x43c   :  { %v1501_v34 = vpop.eup %1500  ;;  %v720_v42 = vmul.f32 %v1499_v25, %v718_v17  ;;  %vm725_vm8 = vweird.f32 %v1499_v25 }
 0x43d   :  { %v740_v51 = vmul.f32 %v1501_v34, %v738_v16  ;;  %vm726_vm10 = vmor %vm724_vm9, %vm725_vm8  ;;  %vm745_vm12 = vweird.f32 %v1501_v34 }
 0x43e   :  { %v721_v43 = vsub.f32 1.0, %v720_v42  ;;  %vm746_vm14 = vmor %vm744_vm13, %vm745_vm12 }
 0x43f   :  { %v741_v1 = vsub.f32 1.0, %v740_v51  ;;  %v2121_v51 = vld [vmem:[%s2202_s3] ss:$0 sm:$0xff] }
 0x440   :  { %v722_v62 = vmul.f32 %v1499_v25, %v721_v43 }
 0x441   :  { %v742_v18 = vmul.f32 %v1501_v34, %v741_v1 }
 0x442   :  { %v723_v0 = vadd.f32 %v1499_v25, %v722_v62 }
 0x443   :  { %v743_v20 = vadd.f32 %v1501_v34, %v742_v18 }
 0x444   :  { %v727_v9 = vsel %vm726_vm10, %v1499_v25, %v723_v0  ;;  %v1433_v0 = vld [vmem:[%s2206_s6] sm:$0xff] }
 0x445   :  { %v732_v12 = vsel %vm729_vm11, %v731_v2, %v727_v9  ;;  %v747_v24 = vsel %vm746_vm14, %v1501_v34, %v743_v20 }
 0x446   :  { %v755_v15 = vmul.f32 %v754_v6, %v732_v12  ;;  %v752_v28 = vsel %vm749_vm15, %v751_v26, %v747_v24 }
 0x448   :  { %v756_v19 = vadd.f32 %v1324_v14, %v755_v15 }
 0x44a   :  { %1502 = vtanh.f32 %v756_v19 }
 0x450   :  { %v1503_v46 = vpop.eup %1502 }
 0x451   :  { %v758_v27 = vsub.f32 %v2034_v45, %v1503_v46 }
 0x453   :  { %v759_v31 = vmul.f32 %v758_v27, %v752_v28  ;;  %v2138_v27 = vld [vmem:[%s2205_s5] ss:$0 sm:$0xff] }
 0x455   :  { %v2081_v35 = vadd.f32 %v1503_v46, %v759_v31 }
 0x457   :  { %v767_v36 = vpack.c.bf16 %v2081_v35, %v2081_v35  ;;  %v964_v39 = vpack.c.bf16 %v2081_v35, %v2034_v45  ;;  %v1440_v45 = vld [vmem:[%s2206_s6 + $0x38] sm:$0xff] }
 0x458   :  { %1159 = vmatpush.bf16.msrb.mxu1 %v1440_v45 }
 0x459   :  { %776 = vmatmul.bf16.vlgmr.msrb.gmra.mxu2 %v767_v36  ;;  %789 = vmatmul.bf16.vlgmr.msrb.gmra.mxu3 %v767_v36 }
 0x45a   :  { %802 = vmatmul.bf16.vlgmr.msra.gmra.mxu0 %v767_v36 }
 0x45c   :  { %1160 = vmatpush.bf16.msrb.mxu1 %v1439_v53 }
 0x460   :  { %1161 = vmatpush.bf16.msrb.mxu1 %v1438_v8 }
 0x464   :  { %1162 = vmatpush.bf16.msrb.mxu1 %v1437_v54 }
 0x468   :  { %1163 = vmatpush.bf16.msrb.mxu1 %v1436_v58 }
 0x46a   :  { %1042 = vmatmul.bf16.vlgmr.msrb.gmra.mxu0 %v962_v32 }
 0x46c   :  { %1164 = vmatpush.bf16.msrb.mxu1 %v1435_v10  ;;  %v2155_v10 = vld [vmem:[%s2207_s7] ss:$0 sm:$0xff] }
 0x470   :  { %1165 = vmatpush.bf16.msrb.mxu1 %v1434_v33 }
 0x474   :  { %1166 = vmatpush.bf16.msrb.mxu1 %v1433_v0 }
 0x47a   :  { %1047 = vmatmul.bf16.gmra.mxu0 %v963_v37 }
 0x48a   :  { %1052 = vmatmul.bf16.gmra.mxu0 %v964_v39 }
 0x4d7   :  { %v803_v40 = vpop.f32.mrf.mxu0 }
 0x4d8   :  { %v847_v52 = vadd.f32 %v2121_v51, %v803_v40 }
 0x4dc   :  { %v777_v49 = vpop.f32.mrf.mxu2  ;;  %v790_v21 = vpop.f32.mrf.mxu3 }
 0x4dd   :  { %v807_v30 = vadd.f32 %v1327_v44, %v777_v49  ;;  %v827_v50 = vadd.f32 %v1328_v48, %v790_v21 }
 0x4df   :  { %v1330_v29 = vmul.f32 -1.442695, %v807_v30  ;;  %v1331_v41 = vmul.f32 -1.442695, %v827_v50  ;;  %v805_v57 = vpop.f32.mrf.mxu0 }
 0x4e1   :  { %1504 = vpow2.f32 %v1330_v29 }
 0x4e2   :  { %1506 = vpow2.f32 %v1331_v41 }
 0x4e4   :  { %v779_v38 = vpop.f32.mrf.mxu2  ;;  %v792_v47 = vpop.f32.mrf.mxu3 }
 0x4e5   :  { %v1332_v38 = vld [vmem:[%s2203_s0 + $0xa8] sm:$0xff] }
 0x4e7   :  { %v1505_v56 = vpop.eup %1504  ;;  %v1043_v6 = vpop.f32.mrf.mxu0 }
 0x4e8   :  { %v1507_v63 = vpop.eup %1506  ;;  %v811_v4 = vadd.f32 1.0, %v1505_v56 }
 0x4e9   :  { %v831_v13 = vadd.f32 1.0, %v1507_v63 }
 0x4ea   :  { %1508 = vrcp.f32 %v811_v4  ;;  %v823_v16 = vand.u32 2147483648, %v811_v4  ;;  %v821_v25 = vand.u32 2147483647, %v811_v4  ;;  %vm817_vm1 = vweird.f32 %v811_v4 }
 0x4eb   :  { %1510 = vrcp.f32 %v831_v13  ;;  %v843_v12 = vand.u32 2147483648, %v831_v13  ;;  %vm837_vm5 = vweird.f32 %v831_v13  ;;  %v841_v14 = vand.u32 2147483647, %v831_v13 }
 0x4ec   :  { %v824_v42 = vor.u32 1.1754944e-38, %v823_v16  ;;  %vm822_vm3 = vcmp.eq.f32.partialorder %v821_v25, 8.507059e+37 }
 0x4ed   :  { %v844_v19 = vor.u32 1.1754944e-38, %v843_v12  ;;  %vm842_vm7 = vcmp.eq.f32.partialorder %v841_v14, 8.507059e+37 }
 0x4ef   :  { %v1045_v24 = vpop.f32.mrf.mxu0 }
 0x4f0   :  { %v1509_v55 = vpop.eup %1508  ;;  %v1046_v31 = vadd.f32 %v2138_v27, %v1045_v24 }
 0x4f1   :  { %v1511_v3 = vpop.eup %1510  ;;  %v813_v7 = vmul.f32 %v1509_v55, %v811_v4  ;;  %vm818_vm0 = vweird.f32 %v1509_v55  ;;  %v1333_v4 = vld [vmem:[%s2203_s0 + $0xb0] sm:$0xff] }
 0x4f2   :  { %v833_v17 = vmul.f32 %v1511_v3, %v831_v13  ;;  %vm819_vm2 = vmor %vm817_vm1, %vm818_vm0  ;;  %vm838_vm4 = vweird.f32 %v1511_v3  ;;  %v1064_v36 = vmax.f32 %v1046_v31, 0.0 }
 0x4f3   :  { %v814_v11 = vsub.f32 1.0, %v813_v7  ;;  %vm839_vm6 = vmor %vm837_vm5, %vm838_vm4 }
 0x4f4   :  { %v834_v43 = vsub.f32 1.0, %v833_v17 }
 0x4f5   :  { %v815_v23 = vmul.f32 %v1509_v55, %v814_v11 }
 0x4f6   :  { %v835_v2 = vmul.f32 %v1511_v3, %v834_v43 }
 0x4f7   :  { %v816_v34 = vadd.f32 %v1509_v55, %v815_v23  ;;  %v1048_v28 = vpop.f32.mrf.mxu0 }
 0x4f8   :  { %v836_v9 = vadd.f32 %v1511_v3, %v835_v2  ;;  %v1049_v44 = vadd.f32 %v2138_v27, %v1048_v28 }
 0x4f9   :  { %v820_v60 = vsel %vm819_vm2, %v1509_v55, %v816_v34 }
 0x4fa   :  { %v825_v62 = vsel %vm822_vm3, %v824_v42, %v820_v60  ;;  %v840_v15 = vsel %vm839_vm6, %v1511_v3, %v836_v9  ;;  %v1065_v21 = vmax.f32 %v1049_v44, 0.0 }
 0x4fb   :  { %v848_v1 = vmul.f32 %v847_v52, %v825_v62  ;;  %v845_v22 = vsel %vm842_vm7, %v844_v19, %v840_v15  ;;  %v1334_v15 = vld [vmem:[%s2203_s0 + $0xb8] sm:$0xff] }
 0x4fd   :  { %v849_v5 = vadd.f32 %v1329_v59, %v848_v1 }
 0x4ff   :  { %1512 = vtanh.f32 %v849_v5  ;;  %v1050_v39 = vpop.f32.mrf.mxu0 }
 0x500   :  { %v1051_v40 = vadd.f32 %v2138_v27, %v1050_v39 }
 0x502   :  { %v1066_v49 = vmax.f32 %v1051_v40, 0.0 }
 0x504   :  { %v1088_v30 = vpack.c.bf16 %v1066_v49, %v1065_v21 }
 0x505   :  { %v1513_v18 = vpop.eup %1512 }
 0x506   :  { %v851_v20 = vsub.f32 %v2081_v35, %v1513_v18  ;;  %v1044_v35 = vadd.f32 %v2138_v27, %v1043_v6 }
 0x507   :  { %v1053_v48 = vpop.f32.mrf.mxu0 }
 0x508   :  { %v852_v61 = vmul.f32 %v851_v20, %v845_v22  ;;  %v1063_v32 = vmax.f32 %v1044_v35, 0.0  ;;  %v1054_v41 = vadd.f32 %v2138_v27, %v1053_v48 }
 0x50a   :  { %v2131_v46 = vadd.f32 %v1513_v18, %v852_v61  ;;  %v1087_v37 = vpack.c.bf16 %v1064_v36, %v1063_v32  ;;  %v1067_v45 = vmax.f32 %v1054_v41, 0.0 }
 0x50c   :  { %v860_v26 = vpack.c.bf16 %v2131_v46, %v2131_v46 }
 0x50e   :  { %869 = vmatmul.bf16.vlgmr.msra.gmra.mxu1 %v860_v26  ;;  %882 = vmatmul.bf16.vlgmr.msra.gmra.mxu2 %v860_v26 }
 0x50f   :  { %895 = vmatmul.bf16.vlgmr.msra.gmra.mxu3 %v860_v26  ;;  %v1055_v50 = vpop.f32.mrf.mxu0 }
 0x510   :  { %v1056_v29 = vadd.f32 %v2138_v27, %v1055_v50 }
 0x512   :  { %v1068_v57 = vmax.f32 %v1056_v29, 0.0 }
 0x514   :  { %v1089_v53 = vpack.c.bf16 %v1068_v57, %v1067_v45 }
 0x51e   :  { %1167 = vmatmul.bf16.vlgmr.msrb.gmra.mxu1 %v1087_v37 }
 0x52e   :  { %1172 = vmatmul.bf16.gmra.mxu1 %v1088_v30 }
 0x53e   :  { %1177 = vmatmul.bf16.gmra.mxu1 %v1089_v53 }
 0x58b   :  { %v870_v47 = vpop.f32.mrf.mxu1 }
 0x58c   :  { %v900_v56 = vadd.f32 %v1332_v38, %v870_v47 }
 0x58e   :  { %v1335_v63 = vmul.f32 -1.442695, %v900_v56 }
 0x590   :  { %1514 = vpow2.f32 %v1335_v63 }
 0x591   :  { %v883_v8 = vpop.f32.mrf.mxu2 }
 0x592   :  { %v920_v13 = vadd.f32 %v1333_v4, %v883_v8  ;;  %v896_v54 = vpop.f32.mrf.mxu3 }
 0x593   :  { %v872_v55 = vpop.f32.mrf.mxu1  ;;  %v940_v14 = vadd.f32 %v2121_v51, %v896_v54 }
 0x594   :  { %v1336_v58 = vmul.f32 -1.442695, %v920_v13 }
 0x596   :  { %v1515_v3 = vpop.eup %1514  ;;  %1516 = vpow2.f32 %v1336_v58 }
 0x597   :  { %v904_v7 = vadd.f32 1.0, %v1515_v3 }
 0x599   :  { %1518 = vrcp.f32 %v904_v7  ;;  %v885_v11 = vpop.f32.mrf.mxu2  ;;  %v916_v52 = vand.u32 2147483648, %v904_v7  ;;  %v914_v59 = vand.u32 2147483647, %v904_v7  ;;  %vm910_vm9 = vweird.f32 %v904_v7 }
 0x59a   :  { %v898_v16 = vpop.f32.mrf.mxu3 }
 0x59b   :  { %v1168_v17 = vpop.f32.mrf.mxu1  ;;  %v917_v6 = vor.u32 1.1754944e-38, %v916_v52  ;;  %vm915_vm11 = vcmp.eq.f32.partialorder %v914_v59, 8.507059e+37 }
 0x59c   :  { %v1517_v23 = vpop.eup %1516  ;;  %v1169_v25 = vadd.f32 %v2155_v10, %v1168_v17 }
 0x59d   :  { %v924_v33 = vadd.f32 1.0, %v1517_v23 }
 0x59e   :  { %1188 = vst [vmem:[%s2208_s8] sm:$0xff] %v1169_v25 }
 0x59f   :  { %v1519_v34 = vpop.eup %1518  ;;  %1520 = vrcp.f32 %v924_v33  ;;  %v936_v28 = vand.u32 2147483648, %v924_v33  ;;  %vm930_vm13 = vweird.f32 %v924_v33  ;;  %v934_v51 = vand.u32 2147483647, %v924_v33 }
 0x5a0   :  { %v906_v42 = vmul.f32 %v1519_v34, %v904_v7  ;;  %vm911_vm8 = vweird.f32 %v1519_v34 }
 0x5a1   :  { %vm912_vm10 = vmor %vm910_vm9, %vm911_vm8  ;;  %v937_v37 = vor.u32 1.1754944e-38, %v936_v28  ;;  %vm935_vm15 = vcmp.eq.f32.partialorder %v934_v51, 8.507059e+37 }
 0x5a2   :  { %v907_v43 = vsub.f32 1.0, %v906_v42 }
 0x5a3   :  { %v1170_v60 = vpop.f32.mrf.mxu1 }
 0x5a4   :  { %v908_v62 = vmul.f32 %v1519_v34, %v907_v43  ;;  %v1171_v0 = vadd.f32 %v2155_v10, %v1170_v60 }
 0x5a5   :  { %v1521_v1 = vpop.eup %1520 }
 0x5a6   :  { %v926_v2 = vmul.f32 %v1521_v1, %v924_v33  ;;  %v909_v5 = vadd.f32 %v1519_v34, %v908_v62  ;;  %1189 = vst [vmem:[%s2208_s8 + $0x8] sm:$0xff] %v1171_v0  ;;  %vm931_vm12 = vweird.f32 %v1521_v1 }
 0x5a7   :  { %vm932_vm14 = vmor %vm930_vm13, %vm931_vm12 }
 0x5a8   :  { %v927_v9 = vsub.f32 1.0, %v926_v2  ;;  %v913_v12 = vsel %vm912_vm10, %v1519_v34, %v909_v5 }
 0x5a9   :  { %v918_v18 = vsel %vm915_vm11, %v917_v6, %v913_v12 }
 0x5aa   :  { %v941_v19 = vmul.f32 %v940_v14, %v918_v18  ;;  %v928_v22 = vmul.f32 %v1521_v1, %v927_v9 }
 0x5ab   :  { %v1173_v20 = vpop.f32.mrf.mxu1 }
 0x5ac   :  { %v942_v61 = vadd.f32 %v1334_v15, %v941_v19  ;;  %v1174_v24 = vadd.f32 %v2155_v10, %v1173_v20  ;;  %v929_v26 = vadd.f32 %v1521_v1, %v928_v22 }
 0x5ae   :  { %1522 = vtanh.f32 %v942_v61  ;;  %1190 = vst [vmem:[%s2208_s8 + $0x10] sm:$0xff] %v1174_v24  ;;  %v933_v35 = vsel %vm932_vm14, %v1521_v1, %v929_v26 }
 0x5af   :  { %v938_v40 = vsel %vm935_vm15, %v937_v37, %v933_v35 }
 0x5b3   :  { %v1175_v31 = vpop.f32.mrf.mxu1 }
 0x5b4   :  { %v1523_v36 = vpop.eup %1522  ;;  %v1176_v32 = vadd.f32 %v2155_v10, %v1175_v31 }
 0x5b5   :  { %v944_v39 = vsub.f32 %v2131_v46, %v1523_v36 }
 0x5b6   :  { %1191 = vst [vmem:[%s2208_s8 + $0x18] sm:$0xff] %v1176_v32 }
 0x5b7   :  { %v945_v44 = vmul.f32 %v944_v39, %v938_v40 }
 0x5b9   :  { %v946_v48 = vadd.f32 %v1523_v36, %v945_v44 }
 0x5bb   :  { %v1178_v49 = vpop.f32.mrf.mxu1  ;;  %953 = vst [vmem:[%s2209_s9] sm:$0xff] %v946_v48  ;;  %v965_v21 = vpack.c.bf16 %v946_v48, %v2131_v46 }
 0x5bc   :  { %v1179_v30 = vadd.f32 %v2155_v10, %v1178_v49 }
 0x5bd   :  { %1057 = vmatmul.bf16.gmra.mxu0 %v965_v21 }
 0x5be   :  { %1192 = vst [vmem:[%s2208_s8 + $0x20] sm:$0xff] %v1179_v30 }
 0x5c3   :  { %v1180_v50 = vpop.f32.mrf.mxu1 }
 0x5c4   :  { %v1181_v29 = vadd.f32 %v2155_v10, %v1180_v50 }
 0x5c6   :  { %1193 = vst [vmem:[%s2208_s8 + $0x28] sm:$0xff] %v1181_v29 }
 0x63a   :  { %v1058_v41 = vpop.f32.mrf.mxu0 }
 0x63b   :  { %v1059_v57 = vadd.f32 %v2138_v27, %v1058_v41 }
 0x63d   :  { %v1069_v53 = vmax.f32 %v1059_v57, 0.0 }
 0x642   :  { %v1060_v45 = vpop.f32.mrf.mxu0 }
 0x643   :  { %v1061_v46 = vadd.f32 %v2138_v27, %v1060_v45 }
 0x645   :  { %v1070_v38 = vmax.f32 %v1061_v46, 0.0 }
 0x647   :  { %v1090_v47 = vpack.c.bf16 %v1070_v38, %v1069_v53 }
 0x649   :  { %1182 = vmatmul.bf16.gmra.mxu1 %v1090_v47 }
 0x6c6   :  { %v1183_v56 = vpop.f32.mrf.mxu1 }
 0x6c7   :  { %v1184_v63 = vadd.f32 %v2155_v10, %v1183_v56 }
 0x6c9   :  { %1194 = vst [vmem:[%s2208_s8 + $0x30] sm:$0xff] %v1184_v63 }
 0x6ce   :  { %v1185_v4 = vpop.f32.mrf.mxu1 }
 0x6cf   :  { %v1186_v8 = vadd.f32 %v2155_v10, %v1185_v4 }
 0x6d1   :  { %1195 = vst [vmem:[%s2208_s8 + $0x38] sm:$0xff] %v1186_v8 }

</bundles_post_ra>
